<compile_context>
chip_gen: v5e
topology: v5e:2x2
jax: 0.10.0
libtpu: 0.0.40
codegen_flags: <defaults>
</compile_context>

<pallas_src>
import functools

import jax
import jax.numpy as jnp
import numpy as np
from jax.experimental import pallas as pl
from jax.experimental.pallas import tpu as pltpu


_EPS = 1e-8


def _round_up(v, m):
    return ((v + m - 1) // m) * m


def _helmholtz_kernel(num_sources, eps,
                      params_ref,   # scalar-prefetch (SMEM): (num_sources*6,) f32
                      xyz_ref,      # input tile  (3, tile_rows, 128) VMEM
                      o_ref):       # output tile (tile_rows, 128) VMEM
    xc = xyz_ref[0]
    yc = xyz_ref[1]
    zc = xyz_ref[2]
    # Hoisted out of the source loop: squared norm of every point.
    s = xc * xc + yc * yc + zc * zc
    acc = jnp.zeros_like(xc)
    # num_sources is a small static int -> fully unrolled Python loop.
    for i in range(num_sources):
        base = 6 * i
        a_i = params_ref[base + 0]
        k_i = params_ref[base + 1]
        mx = params_ref[base + 2]      # -2 * x0
        my = params_ref[base + 3]      # -2 * y0
        mz = params_ref[base + 4]      # -2 * z0
        c_eps = params_ref[base + 5]   # x0^2 + y0^2 + z0^2 + eps
        # (x-x0)^2 + (y-y0)^2 + (z-z0)^2 + eps, expanded form.
        rsq = s + xc * mx + yc * my + zc * mz + c_eps
        # Guard against catastrophic cancellation / padded lanes going negative.
        rsq = jnp.maximum(rsq, eps)
        inv_r = jax.lax.rsqrt(rsq)     # exact EUP rsqrt (do NOT use approx)
        r = rsq * inv_r                # r = sqrt(rsq)
        acc = acc + a_i * jnp.sin(k_i * r) * inv_r
    o_ref[...] = acc


def _source_params(A, k, source_positions, eps):
    """Pack per-source scalars for SMEM prefetch: [A, k, -2x0, -2y0, -2z0, |p0|^2+eps]."""
    sp = source_positions.astype(jnp.float32)
    x0, y0, z0 = sp[:, 0], sp[:, 1], sp[:, 2]
    c_eps = x0 * x0 + y0 * y0 + z0 * z0 + eps
    return jnp.stack([A.astype(jnp.float32), k.astype(jnp.float32),
                      -2.0 * x0, -2.0 * y0, -2.0 * z0, c_eps], axis=1).reshape(-1)


def helmholtz_feature_planar(xyz, A, k, source_positions, *, tile_rows=2048,
                             eps=_EPS):
    """Fast path: xyz is the point cloud already in planar (3, N) float32 layout.

    Returns a flat (N,) float32 feature vector.
    """
    n = xyz.shape[1]
    num_sources = int(A.shape[0])
    lanes = 128

    # --- tiling -------------------------------------------------------------
    rows_needed = max(8, _round_up(pl.cdiv(n, lanes), 8))     # rows of 128 lanes
    tile = min(_round_up(max(8, int(tile_rows)), 8), rows_needed)
    # Megacore (v7x) awareness: prefer >= 4 parallel steps, but only when each
    # tile stays >= 256 rows, so single-TC chips (v5e/v6e) never pay for tiny
    # tiles / extra grid steps.
    if rows_needed >= 4 * 256:
        tile = min(tile, _round_up(pl.cdiv(rows_needed, 4), 8))
    elif rows_needed >= 2 * 256:
        tile = min(tile, _round_up(pl.cdiv(rows_needed, 2), 8))
    grid_len = pl.cdiv(rows_needed, tile)
    # Keep both TensorCores load-balanced: even grid length whenever split.
    if grid_len > 1 and grid_len % 2 == 1:
        grid_len += 1
        tile = _round_up(pl.cdiv(rows_needed, grid_len), 8)
        grid_len = pl.cdiv(rows_needed, tile)
    rows = grid_len * tile
    n_pad = rows * lanes

    # --- inputs --------------------------------------------------------------
    # Pad only along the point axis (zeros); padded lanes stay finite thanks to
    # the rsq clamp in the kernel, and are sliced off below.
    planes = jnp.pad(xyz.astype(jnp.float32),
                     ((0, 0), (0, n_pad - n))).reshape(3, rows, lanes)
    params = _source_params(A, k, source_positions, eps)

    in_spec_kwargs = {}
    if grid_len > 2:
        # Extra input buffering helps hide DMA startup on the more
        # DMA-bound v5e; negligible VMEM cost.
        in_spec_kwargs["pipeline_mode"] = pl.Buffered(3)
    in_spec = pl.BlockSpec((3, tile, lanes), lambda i, p: (0, i, 0),
                           **in_spec_kwargs)
    out_spec = pl.BlockSpec((tile, lanes), lambda i, p: (i, 0))

    # Advisory cost estimate: ~12 flops + 2 transcendentals per point per
    # source (+5 hoisted flops); 3 f32 planes in, 1 f32 plane out.
    cost = pl.CostEstimate(
        flops=(12 * num_sources + 5) * n_pad,
        transcendentals=2 * num_sources * n_pad,
        bytes_accessed=16 * n_pad,
    )

    out = pl.pallas_call(
        functools.partial(_helmholtz_kernel, num_sources, eps),
        out_shape=jax.ShapeDtypeStruct((rows, lanes), jnp.float32),
        grid_spec=pltpu.PrefetchScalarGridSpec(
            num_scalar_prefetch=1,
            grid=(grid_len,),
            in_specs=[in_spec],
            out_specs=out_spec,
        ),
        compiler_params=pltpu.CompilerParams(
            dimension_semantics=("parallel",)),
        cost_estimate=cost,
    )(params, planes)

    return out.reshape(-1)[:n]


def helmholtz_reference(points, A, k, source_positions, eps=_EPS):
    """Pure-jnp reference (also used as the small-N fallback path)."""
    xc = points[:, 0:1].astype(jnp.float32)
    yc = points[:, 1:2].astype(jnp.float32)
    zc = points[:, 2:3].astype(jnp.float32)
    phi = jnp.zeros_like(xc)
    for i in range(A.shape[0]):
        x0, y0, z0 = source_positions[i]
        r = jnp.sqrt((xc - x0) ** 2 + (yc - y0) ** 2 + (zc - z0) ** 2 + eps)
        phi = phi + A[i] * jnp.sin(k[i] * r) / r
    return phi


def helmholtz_feature(points, A, k, source_positions, *, tile_rows=2048,
                      use_pallas=None):
    """points: (N, 3) float32 with columns [x, y, z]. Returns (N, 1) float32.

    Note: the Pallas path wants planar (3, N) data; if the producer can emit
    that layout directly, call `helmholtz_feature_planar` and skip the
    transpose below.
    """
    n = points.shape[0]
    if use_pallas is None:
        # Small-N fallback: pallas_call fixed overhead + layout plumbing lose
        # to XLA-fused elementwise code for tiny point clouds.
        use_pallas = n >= 16384
    if not use_pallas:
        return helmholtz_reference(points, A, k, source_positions)
    # Transpose first, pad inside the planar path (one small pass; prefer
    # producing the planar layout upstream to avoid it entirely).
    xyz = points.astype(jnp.float32).T                       # (3, N)
    phi = helmholtz_feature_planar(xyz, A, k, source_positions,
                                   tile_rows=tile_rows)
    return phi.reshape(n, 1)


if __name__ == "__main__":
    num_sources = 3
    n_points = 2048  # small point cloud; input shape (N, 3) with cols x,y,z

    key = jax.random.PRNGKey(0)
    k_pts, k_pos = jax.random.split(key)

    # Deterministic parameter init mirroring the module's __init__:
    #   A = ones(num_sources), k = ones(num_sources),
    #   source_positions = uniform(num_sources, 3)
    A = jnp.ones((num_sources,), dtype=jnp.float32)
    kparam = jnp.ones((num_sources,), dtype=jnp.float32)
    source_positions = jax.random.uniform(
        k_pos, (num_sources, 3), dtype=jnp.float32)

    points = jax.random.normal(k_pts, (n_points, 3), dtype=jnp.float32)

    # Force the Pallas path (the auto heuristic would pick the jnp fallback
    # at this tiny size).
    out = helmholtz_feature(points, A, kparam, source_positions,
                            use_pallas=True)
    out = jax.block_until_ready(out)

    ref = helmholtz_reference(points, A, kparam, source_positions)
    np.testing.assert_allclose(np.asarray(out), np.asarray(ref),
                               rtol=1e-5, atol=1e-5)
    assert out.shape == (n_points, 1)
    print("KERNEL_OK")
</pallas_src>

<mosaic_0001>
module attributes {stable_mosaic.version = 11 : i64} {
  func.func @_helmholtz_kernel(%arg0: i32, %arg1: memref<18xf32, #tpu.memory_space<smem>>, %arg2: memref<3x16x128xf32, #tpu.memory_space<vmem>>, %arg3: memref<16x128xf32, #tpu.memory_space<vmem>>) attributes {dimension_semantics = [#tpu.dimension_semantics<parallel>], iteration_bounds = array<i64: 1>, scalar_prefetch = 1 : i64, scratch_operands = 0 : i64, tpu.core_type = #tpu.core_type<tc>, window_params = [{transform_indices = @transform_0, window_bounds = array<i64: 3, 16, 128>}, {transform_indices = @transform_1, window_bounds = array<i64: 16, 128>}]} {
    %c0 = arith.constant 0 : index
    %c0_0 = arith.constant 0 : index
    %c0_1 = arith.constant 0 : index
    %0 = vector.load %arg2[%c0, %c0_0, %c0_1] : memref<3x16x128xf32, #tpu.memory_space<vmem>>, vector<1x16x128xf32>
    %1 = vector.shape_cast %0 : vector<1x16x128xf32> to vector<16x128xf32>
    %c1 = arith.constant 1 : index
    %c0_2 = arith.constant 0 : index
    %c0_3 = arith.constant 0 : index
    %2 = vector.load %arg2[%c1, %c0_2, %c0_3] : memref<3x16x128xf32, #tpu.memory_space<vmem>>, vector<1x16x128xf32>
    %3 = vector.shape_cast %2 : vector<1x16x128xf32> to vector<16x128xf32>
    %c2 = arith.constant 2 : index
    %c0_4 = arith.constant 0 : index
    %c0_5 = arith.constant 0 : index
    %4 = vector.load %arg2[%c2, %c0_4, %c0_5] : memref<3x16x128xf32, #tpu.memory_space<vmem>>, vector<1x16x128xf32>
    %5 = vector.shape_cast %4 : vector<1x16x128xf32> to vector<16x128xf32>
    %6 = arith.mulf %1, %1 : vector<16x128xf32>
    %7 = arith.mulf %3, %3 : vector<16x128xf32>
    %8 = arith.addf %6, %7 : vector<16x128xf32>
    %9 = arith.mulf %5, %5 : vector<16x128xf32>
    %10 = arith.addf %8, %9 : vector<16x128xf32>
    %cst = arith.constant 0.000000e+00 : f32
    %11 = vector.broadcast %cst : f32 to vector<16x128xf32>
    %c0_6 = arith.constant 0 : index
    %12 = memref.load %arg1[%c0_6] : memref<18xf32, #tpu.memory_space<smem>>
    %c1_7 = arith.constant 1 : index
    %13 = memref.load %arg1[%c1_7] : memref<18xf32, #tpu.memory_space<smem>>
    %c2_8 = arith.constant 2 : index
    %14 = memref.load %arg1[%c2_8] : memref<18xf32, #tpu.memory_space<smem>>
    %c3 = arith.constant 3 : index
    %15 = memref.load %arg1[%c3] : memref<18xf32, #tpu.memory_space<smem>>
    %c4 = arith.constant 4 : index
    %16 = memref.load %arg1[%c4] : memref<18xf32, #tpu.memory_space<smem>>
    %c5 = arith.constant 5 : index
    %17 = memref.load %arg1[%c5] : memref<18xf32, #tpu.memory_space<smem>>
    %18 = vector.broadcast %14 : f32 to vector<16x128xf32>
    %19 = arith.mulf %1, %18 : vector<16x128xf32>
    %20 = arith.addf %10, %19 : vector<16x128xf32>
    %21 = vector.broadcast %15 : f32 to vector<16x128xf32>
    %22 = arith.mulf %3, %21 : vector<16x128xf32>
    %23 = arith.addf %20, %22 : vector<16x128xf32>
    %24 = vector.broadcast %16 : f32 to vector<16x128xf32>
    %25 = arith.mulf %5, %24 : vector<16x128xf32>
    %26 = arith.addf %23, %25 : vector<16x128xf32>
    %27 = vector.broadcast %17 : f32 to vector<16x128xf32>
    %28 = arith.addf %26, %27 : vector<16x128xf32>
    %cst_9 = arith.constant 9.99999993E-9 : f32
    %29 = vector.broadcast %cst_9 : f32 to vector<16x128xf32>
    %30 = arith.maximumf %28, %29 : vector<16x128xf32>
    %31 = math.rsqrt %30 : vector<16x128xf32>
    %32 = arith.mulf %30, %31 : vector<16x128xf32>
    %33 = vector.broadcast %13 : f32 to vector<16x128xf32>
    %34 = arith.mulf %33, %32 : vector<16x128xf32>
    %35 = math.sin %34 : vector<16x128xf32>
    %36 = vector.broadcast %12 : f32 to vector<16x128xf32>
    %37 = arith.mulf %36, %35 : vector<16x128xf32>
    %38 = arith.mulf %37, %31 : vector<16x128xf32>
    %39 = arith.addf %11, %38 : vector<16x128xf32>
    %c6 = arith.constant 6 : index
    %40 = memref.load %arg1[%c6] : memref<18xf32, #tpu.memory_space<smem>>
    %c7 = arith.constant 7 : index
    %41 = memref.load %arg1[%c7] : memref<18xf32, #tpu.memory_space<smem>>
    %c8 = arith.constant 8 : index
    %42 = memref.load %arg1[%c8] : memref<18xf32, #tpu.memory_space<smem>>
    %c9 = arith.constant 9 : index
    %43 = memref.load %arg1[%c9] : memref<18xf32, #tpu.memory_space<smem>>
    %c10 = arith.constant 10 : index
    %44 = memref.load %arg1[%c10] : memref<18xf32, #tpu.memory_space<smem>>
    %c11 = arith.constant 11 : index
    %45 = memref.load %arg1[%c11] : memref<18xf32, #tpu.memory_space<smem>>
    %46 = vector.broadcast %42 : f32 to vector<16x128xf32>
    %47 = arith.mulf %1, %46 : vector<16x128xf32>
    %48 = arith.addf %10, %47 : vector<16x128xf32>
    %49 = vector.broadcast %43 : f32 to vector<16x128xf32>
    %50 = arith.mulf %3, %49 : vector<16x128xf32>
    %51 = arith.addf %48, %50 : vector<16x128xf32>
    %52 = vector.broadcast %44 : f32 to vector<16x128xf32>
    %53 = arith.mulf %5, %52 : vector<16x128xf32>
    %54 = arith.addf %51, %53 : vector<16x128xf32>
    %55 = vector.broadcast %45 : f32 to vector<16x128xf32>
    %56 = arith.addf %54, %55 : vector<16x128xf32>
    %cst_10 = arith.constant 9.99999993E-9 : f32
    %57 = vector.broadcast %cst_10 : f32 to vector<16x128xf32>
    %58 = arith.maximumf %56, %57 : vector<16x128xf32>
    %59 = math.rsqrt %58 : vector<16x128xf32>
    %60 = arith.mulf %58, %59 : vector<16x128xf32>
    %61 = vector.broadcast %41 : f32 to vector<16x128xf32>
    %62 = arith.mulf %61, %60 : vector<16x128xf32>
    %63 = math.sin %62 : vector<16x128xf32>
    %64 = vector.broadcast %40 : f32 to vector<16x128xf32>
    %65 = arith.mulf %64, %63 : vector<16x128xf32>
    %66 = arith.mulf %65, %59 : vector<16x128xf32>
    %67 = arith.addf %39, %66 : vector<16x128xf32>
    %c12 = arith.constant 12 : index
    %68 = memref.load %arg1[%c12] : memref<18xf32, #tpu.memory_space<smem>>
    %c13 = arith.constant 13 : index
    %69 = memref.load %arg1[%c13] : memref<18xf32, #tpu.memory_space<smem>>
    %c14 = arith.constant 14 : index
    %70 = memref.load %arg1[%c14] : memref<18xf32, #tpu.memory_space<smem>>
    %c15 = arith.constant 15 : index
    %71 = memref.load %arg1[%c15] : memref<18xf32, #tpu.memory_space<smem>>
    %c16 = arith.constant 16 : index
    %72 = memref.load %arg1[%c16] : memref<18xf32, #tpu.memory_space<smem>>
    %c17 = arith.constant 17 : index
    %73 = memref.load %arg1[%c17] : memref<18xf32, #tpu.memory_space<smem>>
    %74 = vector.broadcast %70 : f32 to vector<16x128xf32>
    %75 = arith.mulf %1, %74 : vector<16x128xf32>
    %76 = arith.addf %10, %75 : vector<16x128xf32>
    %77 = vector.broadcast %71 : f32 to vector<16x128xf32>
    %78 = arith.mulf %3, %77 : vector<16x128xf32>
    %79 = arith.addf %76, %78 : vector<16x128xf32>
    %80 = vector.broadcast %72 : f32 to vector<16x128xf32>
    %81 = arith.mulf %5, %80 : vector<16x128xf32>
    %82 = arith.addf %79, %81 : vector<16x128xf32>
    %83 = vector.broadcast %73 : f32 to vector<16x128xf32>
    %84 = arith.addf %82, %83 : vector<16x128xf32>
    %cst_11 = arith.constant 9.99999993E-9 : f32
    %85 = vector.broadcast %cst_11 : f32 to vector<16x128xf32>
    %86 = arith.maximumf %84, %85 : vector<16x128xf32>
    %87 = math.rsqrt %86 : vector<16x128xf32>
    %88 = arith.mulf %86, %87 : vector<16x128xf32>
    %89 = vector.broadcast %69 : f32 to vector<16x128xf32>
    %90 = arith.mulf %89, %88 : vector<16x128xf32>
    %91 = math.sin %90 : vector<16x128xf32>
    %92 = vector.broadcast %68 : f32 to vector<16x128xf32>
    %93 = arith.mulf %92, %91 : vector<16x128xf32>
    %94 = arith.mulf %93, %87 : vector<16x128xf32>
    %95 = arith.addf %67, %94 : vector<16x128xf32>
    %c0_12 = arith.constant 0 : index
    %c0_13 = arith.constant 0 : index
    %96 = vector.load %arg3[%c0_12, %c0_13] : memref<16x128xf32, #tpu.memory_space<vmem>>, vector<16x128xf32>
    tpu.vector_store %arg3[%c0_12, %c0_13], %95 {strides = array<i32>} : memref<16x128xf32, #tpu.memory_space<vmem>>, vector<16x128xf32>,
    return
  }
  func.func @transform_0(%arg0: i32, %arg1: memref<18xf32, #tpu.memory_space<smem>>) -> (i32, i32, i32) {
    %c0_i32 = arith.constant 0 : i32
    %c0_i32_0 = arith.constant 0 : i32
    %c0_i32_1 = arith.constant 0 : i32
    return %c0_i32, %arg0, %c0_i32_0 : i32, i32, i32
  }
  func.func @transform_1(%arg0: i32, %arg1: memref<18xf32, #tpu.memory_space<smem>>) -> (i32, i32) {
    %c0_i32 = arith.constant 0 : i32
    %c0_i32_0 = arith.constant 0 : i32
    return %arg0, %c0_i32 : i32, i32
  }
}

</mosaic_0001>

<bundles_post_ra>
// kernel: tpu_custom_call.1
= control target key start
LH: loop header
LB: loop body
LE: loop exit
PB: predicated region body
PF: predicated region fallthrough
CT: control target
= control target key end

     0   :  { %s1304_s12 = smov [#allocation3]   ;;  %s2367_s0 = inlined_call_operand.hbm [shape: f32[18], index: 0, kind: input, shape index: {}]   ;;  %s2368_s1 = inlined_call_operand.hbm [shape: f32[3,16,128], index: 1, kind: input, shape index: {}]   ;;  %s2369_s2 = inlined_call_operand.hbm [shape: f32[16,128], index: 2, kind: output, shape index: {}]  }
   0x1   :  { %s8_s11 = sshll.u32 %s2367_s0, 4  ;;  %s9_s11 = int_to_ptr.hbm [resolvable:$true] %s8_s11 }
   0x2   :  { %11 = dma.hbm_to_smem %s9_s11, 16, %s1304_s12, [#allocation2] }
   0x3   :  { %1298 = dma.done.wait [#allocation2], 16 }
   0x4   :  { %1299 = vsyncadd [#allocation2], 4294967280 }
   0x5   :  { %14 = sfence }
   0x6   :  { %15 = vsyncpa [#allocation5], 0 }
   0x7   :  { %16 = vsyncpa [#allocation6], 0  ;;  %s21_s15 = sshll.u32 %s2368_s1, 4  ;;  %s1305_s16 = smov [#allocation4]   ;;  %s22_s15 = int_to_ptr.hbm [resolvable:$true] %s21_s15 }
   0x8   :  { %s23_s17 = sshll.u32 %s1305_s16, 4  ;;  %s1306_s18 = smov 128   ;;  %s24_s17 = int_to_ptr.vmem [resolvable:$true] %s23_s17 }
   0x9   :  { %s1307_s19 = smov 8  }
   0xa   :  { %29 = dma.hbm_to_vmem [thread:$0]  %s22_s15, 768, %s24_s17, [#allocation5], %s1306_s18, %s1306_s18, %s1307_s19  }
   0xb   :  { %1300 = dma.done.wait [#allocation5], 768  }
   0xc   :  { %1301 = vsyncadd [#allocation5], 4294966528  ;;  %s1178_s0 = sld [smem:[#allocation3 + $0x2]]  ;;  %v1342_v0 = vld [vmem:[#allocation4] sm:$0xff]  ;;  %v1344_v1 = vld [vmem:[#allocation4 + $0x8] sm:$0xff]  ;;  %s1315_s8 = smov [#allocation7]  }
   0xd   :  { %s1179_s20 = sld [smem:[#allocation3 + $0x3]]  ;;  %v1346_v2 = vld [vmem:[#allocation4 + $0x10] sm:$0xff]  ;;  %v1350_v3 = vld [vmem:[#allocation4 + $0x18] sm:$0xff]  ;;  %v40_v4 = vld [vmem:[#allocation4 + $0x20] sm:$0xff]  ;;  %v42_v6 = vmul.f32 %v1342_v0, %v1342_v0  ;;  %v43_v7 = vmul.f32 %v1344_v1, %v1344_v1  ;;  %s1162_s9 = sshll.u32 %s1315_s8, 4  ;;  %s1163_s9 = int_to_ptr.vmem [resolvable:$true] %s1162_s9 }
   0xe   :  { %s1340_s21 = sld [smem:[#allocation3 + $0x4]]  ;;  %v1352_v5 = vld [vmem:[#allocation4 + $0x28] sm:$0xff]  ;;  %v44_v8 = vmul.f32 %v1346_v2, %v1346_v2  ;;  %v45_v9 = vmul.f32 %v1350_v3, %v1350_v3  ;;  %v48_v10 = vmul.f32 %v40_v4, %v40_v4  ;;  %s1164_s12 = sshll.u32 %s2369_s2, 4  ;;  %s1165_s12 = int_to_ptr.hbm [resolvable:$true] %s1164_s12 }
   0xf   :  { %s1348_s1 = sld [smem:[#allocation3 + $0x5]]  ;;  %v49_v11 = vmul.f32 %v1352_v5, %v1352_v5 }
  0x10   :  { %s1360_s22 = sld [smem:[#allocation3 + $0x8]]  ;;  %v46_v13 = vadd.f32 %v44_v8, %v42_v6  ;;  %v47_v16 = vadd.f32 %v45_v9, %v43_v7 }
  0x11   :  { %s1366_s23 = sld [smem:[#allocation3 + $0x9]] }
  0x12   :  { %v58_v12 = vstv %s1178_s0  ;;  %s1369_s24 = sld [smem:[#allocation3 + $0xa]]  ;;  %v1373_v19 = vadd.f32 %v48_v10, %v46_v13  ;;  %v1376_v21 = vadd.f32 %v49_v11, %v47_v16 }
  0x13   :  { %v59_v14 = vmul.f32 %v58_v12, %v1342_v0  ;;  %v63_v15 = vstv %s1179_s20  ;;  %v60_v17 = vmul.f32 %v58_v12, %v1344_v1  ;;  %s1387_s25 = sld [smem:[#allocation3 + $0xb]] }
  0x14   :  { %v68_v18 = vstv %s1340_s21  ;;  %v64_v20 = vmul.f32 %v63_v15, %v1346_v2  ;;  %v65_v22 = vmul.f32 %v63_v15, %v1350_v3  ;;  %s1400_s26 = sld [smem:[#allocation3 + $0x1]] }
  0x15   :  { %v61_v23 = vadd.f32 %v59_v14, %v1373_v19  ;;  %v69_v24 = vmul.f32 %v68_v18, %v40_v4  ;;  %v62_v26 = vadd.f32 %v60_v17, %v1376_v21  ;;  %v70_v27 = vmul.f32 %v68_v18, %v1352_v5  ;;  %s1446_s27 = sld [smem:[#allocation3 + $0x7]] }
  0x16   :  { %v426_v25 = vstv %s1360_s22  ;;  %v73_v34 = vstv %s1348_s1  ;;  %s1796_s28 = sld [smem:[#allocation3 + $0xe]] }
  0x17   :  { %v427_v28 = vmul.f32 %v426_v25, %v1342_v0  ;;  %v431_v29 = vstv %s1366_s23  ;;  %v66_v30 = vadd.f32 %v64_v20, %v61_v23  ;;  %v67_v33 = vadd.f32 %v65_v22, %v62_v26  ;;  %s1819_s29 = sld [smem:[#allocation3 + $0xf]] }
  0x18   :  { %v432_v31 = vmul.f32 %v431_v29, %v1346_v2  ;;  %v436_v32 = vstv %s1369_s24  ;;  %v428_v17 = vmul.f32 %v426_v25, %v1344_v1  ;;  %v433_v22 = vmul.f32 %v431_v29, %v1350_v3  ;;  %s1853_s30 = sld [smem:[#allocation3 + $0x10]] }
  0x19   :  { %v429_v35 = vadd.f32 %v427_v28, %v1373_v19  ;;  %v71_v36 = vadd.f32 %v69_v24, %v66_v30  ;;  %v72_v37 = vadd.f32 %v70_v27, %v67_v33  ;;  %v437_v39 = vmul.f32 %v436_v32, %v40_v4  ;;  %s1876_s3 = sld [smem:[#allocation3 + $0x11]] }
  0x1a   :  { %v441_v45 = vstv %s1387_s25  ;;  %v100_v61 = vstv %s1400_s26  ;;  %v2384_v30 = vmov 683565275   ;;  %s1933_s4 = sld [smem:[#allocation3 + $0xd]] }
  0x1b   :  { %v434_v38 = vadd.f32 %v432_v31, %v429_v35  ;;  %v74_v40 = vadd.f32 %v73_v34, %v71_v36  ;;  %v75_v41 = vadd.f32 %v73_v34, %v72_v37  ;;  %v2381_v31 = vmov 2475754826   ;;  %s2228_s5 = sld [smem:[#allocation3]] }
  0x1c   :  { %v2379_v34 = vmov 2131351028   ;;  %v2377_v36 = vmov 2102212464   ;;  %s2293_s6 = sld [smem:[#allocation3 + $0x6]] }
  0x1d   :  { %v76_v42 = vmax.f32 %v74_v40, 1e-08  ;;  %v77_v43 = vmax.f32 %v75_v41, 1e-08  ;;  %v439_v44 = vadd.f32 %v437_v39, %v434_v38  ;;  %v2375_v38 = vmov 920167782  }
  0x1e   :  { %v430_v40 = vadd.f32 %v428_v17, %v1376_v21  ;;  %v468_v17 = vstv %s1446_s27  ;;  %s2312_s7 = sld [smem:[#allocation3 + $0xc]] }
  0x1f   :  { %1224 = vrsqrt.f32 %v76_v42  ;;  %v442_v46 = vadd.f32 %v441_v45, %v439_v44  ;;  %vm84_vm0 = vweird.f32 %v76_v42  ;;  %vm94_vm3 = vweird.f32 %v77_v43 }
  0x20   :  { %1226 = vrsqrt.f32 %v77_v43 }
  0x21   :  { %v1398_v50 = vmax.f32 %v442_v46, 1e-08 }
  0x23   :  { %1228 = vrsqrt.f32 %v1398_v50  ;;  %vm452_vm7 = vweird.f32 %v1398_v50 }
  0x25   :  { %v1225_v47 = vpop.eup %1224 }
  0x26   :  { %v1227_v48 = vpop.eup %1226  ;;  %v79_v49 = vmul.f32 %v1225_v47, %v76_v42  ;;  %vm85_vm1 = vweird.f32 %v1225_v47 }
  0x27   :  { %v89_v51 = vmul.f32 %v1227_v48, %v77_v43  ;;  %vm86_vm2 = vmor %vm84_vm0, %vm85_vm1  ;;  %vm95_vm4 = vweird.f32 %v1227_v48 }
  0x28   :  { %v80_v52 = vmul.f32 %v1225_v47, %v79_v49  ;;  %vm96_vm5 = vmor %vm94_vm3, %vm95_vm4 }
  0x29   :  { %v90_v53 = vmul.f32 %v1227_v48, %v89_v51  ;;  %v1403_v59 = vpop.eup %1228 }
  0x2a   :  { %v81_v54 = vmul.f32 0.5, %v80_v52  ;;  %v447_v6 = vmul.f32 %v1403_v59, %v1398_v50  ;;  %vm453_vm8 = vweird.f32 %v1403_v59 }
  0x2b   :  { %v91_v55 = vmul.f32 0.5, %v90_v53  ;;  %vm454_vm10 = vmor %vm452_vm7, %vm453_vm8 }
  0x2c   :  { %v82_v56 = vsub.f32 1.5, %v81_v54  ;;  %v448_v10 = vmul.f32 %v1403_v59, %v447_v6  ;;  %v438_v6 = vmul.f32 %v436_v32, %v1352_v5 }
  0x2d   :  { %v92_v57 = vsub.f32 1.5, %v91_v55 }
  0x2e   :  { %v83_v58 = vmul.f32 %v1225_v47, %v82_v56  ;;  %v449_v15 = vmul.f32 0.5, %v448_v10 }
  0x2f   :  { %v93_v62 = vmul.f32 %v1227_v48, %v92_v57 }
  0x30   :  { %v1405_v60 = vsel %vm86_vm2, %v1225_v47, %v83_v58  ;;  %v450_v24 = vsub.f32 1.5, %v449_v15  ;;  %v2373_v47 = vmov 1326507024  }
  0x31   :  { %v98_v63 = vmul.f32 %v1405_v60, %v76_v42  ;;  %v1413_v7 = vsel %vm96_vm5, %v1227_v48, %v93_v62 }
  0x32   :  { %2395 = vst [vmem:[#allocation11_spill] sm:$0xff] %v1413_v7  ;;  %v99_v11 = vmul.f32 %v1413_v7, %v77_v43  ;;  %v451_v44 = vmul.f32 %v1403_v59, %v450_v24 }
  0x33   :  { %v1409_v4 = vmul.f32 %v100_v61, %v98_v63 }
  0x34   :  { %v1419_v16 = vmul.f32 %v100_v61, %v99_v11  ;;  %v1478_v61 = vsel %vm454_vm10, %v1403_v59, %v451_v44  ;;  %v435_v59 = vadd.f32 %v433_v22, %v430_v40 }
  0x35   :  { %v106_v8 = vand.u32 2139095040, %v1409_v4  ;;  %v2372_v13 = vand.u32 2147483647, %v1409_v4  ;;  %2396 = vst [vmem:[#allocation12_spill] sm:$0xff] %v1478_v61  ;;  %v466_v5 = vmul.f32 %v1478_v61, %v1398_v50 }
  0x36   :  { %v261_v27 = vand.u32 2139095040, %v1419_v16 }
  0x37   :  { %v107_v9 = vshrl.u32 %v106_v8, 23  ;;  %v110_v18 = vand.u32 8388607, %v2372_v13 }
  0x38   :  { %v262_v49 = vshrl.u32 %v261_v27, 23  ;;  %v1503_v27 = vmul.f32 %v468_v17, %v466_v5 }
  0x39   :  { %v1182_v12 = vadd.s32 4294967169, %v107_v9  ;;  %v111_v35 = vor.u32 8388608, %v110_v18 }
  0x3a   :  { %v1185_v10 = vadd.s32 4294967169, %v262_v49 }
  0x3b   :  { %v113_v14 = vadd.s32 1, %v1182_v12  ;;  %v1466_v56 = vshll.u32 %v111_v35, 8 }
  0x3c   :  { %v268_v18 = vadd.s32 1, %v1185_v10 }
  0x3d   :  { %vm114_vm6 = vcmp.gt.s32.totalorder %v113_v14, 0 }
  0x3e   :  { %v115_v20 = vsel %vm114_vm6, %v113_v14, 0  ;;  %v152_v14 = vand.u32 65535, %v1466_v56  ;;  %vm269_vm14 = vcmp.gt.s32.totalorder %v268_v18, 0 }
  0x3f   :  { %v117_v23 = vand.u32 31, %v115_v20  ;;  %v1428_v26 = vshrl.u32 %v115_v20, 5  ;;  %v440_v20 = vadd.f32 %v438_v6, %v435_v59 }
  0x41   :  { %v1432_v28 = vsub.s32 32, %v117_v23  ;;  %v120_v25 = vshll.u32 %v2384_v30, %v117_v23  ;;  %v123_v33 = vshll.u32 %v2381_v31, %v117_v23  ;;  %v126_v29 = vshll.u32 %v2379_v34, %v117_v23 }
  0x42   :  { %v129_v37 = vshll.u32 %v2377_v36, %v117_v23  ;;  %v132_v39 = vshll.u32 %v2375_v38, %v117_v23  ;;  %vm135_vm9 = vcmp.lt.s32.totalorder %v1428_v26, 1  ;;  %vm138_vm11 = vcmp.lt.s32.totalorder %v1428_v26, 4 }
  0x43   :  { %v121_v41 = vshrl.u32 %v2381_v31, %v1432_v28  ;;  %v124_v42 = vshrl.u32 %v2379_v34, %v1432_v28  ;;  %v127_v43 = vshrl.u32 %v2377_v36, %v1432_v28  ;;  %v130_v46 = vshrl.u32 %v2375_v38, %v1432_v28 }
  0x44   :  { %v133_v48 = vshrl.u32 %v2373_v47, %v1432_v28  ;;  %vm137_vm12 = vcmp.lt.s32.totalorder %v1428_v26, 3  ;;  %vm136_vm13 = vcmp.lt.s32.totalorder %v1428_v26, 2  ;;  %v153_v23 = vshrl.u32 %v1466_v56, 16 }
  0x45   :  { %v1458_v51 = vor.u32 %v121_v41, %v120_v25  ;;  %v1460_v52 = vor.u32 %v124_v42, %v123_v33  ;;  %v1462_v53 = vor.u32 %v127_v43, %v126_v29  ;;  %v131_v54 = vor.u32 %v130_v46, %v129_v37 }
  0x46   :  { %v134_v55 = vor.u32 %v133_v48, %v132_v39  ;;  %v443_v29 = vadd.f32 %v441_v45, %v440_v20  ;;  %v474_v39 = vand.u32 2139095040, %v1503_v27  ;;  %v270_v43 = vsel %vm269_vm14, %v268_v18, 0 }
  0x47   :  { %v143_v57 = vsel %vm135_vm9, %v1458_v51, %v1460_v52  ;;  %v147_v58 = vsel %vm135_vm9, %v1460_v52, %v1462_v53  ;;  %v144_v62 = vsel %vm138_vm11, %v131_v54, 920167782 }
  0x48   :  { %v148_v63 = vsel %vm138_vm11, %v134_v55, 1326507024  ;;  %v145_v8 = vsel %vm137_vm12, %v1462_v53, %v144_v62  ;;  %v1515_v44 = vmax.f32 %v443_v29, 1e-08  ;;  %v475_v45 = vshrl.u32 %v474_v39, 23 }
  0x49   :  { %v149_v9 = vsel %vm137_vm12, %v131_v54, %v148_v63  ;;  %v146_v11 = vsel %vm136_vm13, %v143_v57, %v145_v8  ;;  %v272_v55 = vand.u32 31, %v270_v43  ;;  %v2388_v62 = vmov 0  }
  0x4a   :  { %v150_v12 = vsel %vm136_vm13, %v147_v58, %v149_v9  ;;  %v177_v15 = vshrl.u32 %v146_v11, 16  ;;  %v176_v22 = vand.u32 65535, %v146_v11  ;;  %1230 = vrsqrt.f32 %v1515_v44 }
  0x4b   :  { %v155_v32 = vshrl.u32 %v150_v12, 16  ;;  %v154_v25 = vand.u32 65535, %v150_v12  ;;  %v1194_v8 = vadd.s32 4294967169, %v475_v45  ;;  %v1527_v9 = vsub.s32 32, %v272_v55 }
  0x4c   :  { %v179_v24 = vmul.u32 %v177_v15, %v152_v14  ;;  %v178_v35 = vmul.u32 %v176_v22, %v152_v14  ;;  %v1509_v50 = vmul.u32 %v176_v22, %v153_v23  ;;  %v181_v57 = vmul.u32 %v177_v15, %v153_v23 }
  0x4d   :  { %v1505_v33 = vmul.u32 %v155_v32, %v152_v14  ;;  %v156_v40 = vmul.u32 %v154_v25, %v152_v14  ;;  %v1512_v41 = vmul.u32 %v154_v25, %v153_v23  ;;  %v159_v58 = vmul.u32 %v155_v32, %v153_v23 }
  0x4e   :  { %v182_v37 = vshll.u32 %v179_v24, 16  ;;  %v184_v46 = vshll.u32 %v1509_v50, 16  ;;  %v2370_v14 = vand.u32 2147483647, %v1419_v16  ;;  %v481_v5 = vadd.s32 1, %v1194_v8 }
  0x4f   :  { %v160_v42 = vshll.u32 %v1505_v33, 16  ;;  %v162_v49 = vshll.u32 %v1512_v41, 16  ;;  %v1532_v32 = vshrl.u32 %v270_v43, 5  ;;  %v275_v15 = vshll.u32 %v2384_v30, %v272_v55 }
  0x50   :  { %vm186_vm15 = vc.u32 %v178_v35, %v182_v37  ;;  %v1518_v48 = vadd.s32 %v182_v37, %v178_v35  ;;  %v284_v18 = vshll.u32 %v2377_v36, %v272_v55  ;;  %v285_v20 = vshrl.u32 %v2375_v38, %v1527_v9  ;;  %v1538_v23 = vpop.eup %1230 }
  0x51   :  { %vm164_vm0 = vc.u32 %v156_v40, %v160_v42  ;;  %v166_v54 = vadd.s32 %v160_v42, %v156_v40  ;;  %v187_v63 = vsel %vm186_vm15, 1, %v2388_v62  ;;  %v183_v22 = vshrl.u32 %v179_v24, 16 }
  0x52   :  { %v165_v6 = vsel %vm164_vm0, 1, %v2388_v62  ;;  %vm190_vm1 = vc.u32 %v1518_v48, %v184_v46  ;;  %v189_v10 = vadd.s32 %v187_v63, %v181_v57  ;;  %v287_v29 = vshll.u32 %v2375_v38, %v272_v55 }
  0x53   :  { %vm168_vm2 = vc.u32 %v166_v54, %v162_v49  ;;  %v167_v59 = vadd.s32 %v165_v6, %v159_v58  ;;  %v191_v11 = vsel %vm190_vm1, 1, %v2388_v62  ;;  %v288_v35 = vshrl.u32 %v2373_v47, %v1527_v9 }
  0x54   :  { %v169_v12 = vsel %vm168_vm2, 1, %v2388_v62  ;;  %v193_v25 = vadd.s32 %v191_v11, %v189_v10  ;;  %v161_v37 = vshrl.u32 %v1505_v33, 16  ;;  %v276_v40 = vshrl.u32 %v2381_v31, %v1527_v9 }
  0x55   :  { %v171_v39 = vadd.s32 %v169_v12, %v167_v59  ;;  %v278_v42 = vshll.u32 %v2381_v31, %v272_v55  ;;  %v279_v43 = vshrl.u32 %v2379_v34, %v1527_v9  ;;  %v281_v45 = vshll.u32 %v2379_v34, %v272_v55 }
  0x56   :  { %v282_v24 = vshrl.u32 %v2377_v36, %v1527_v9  ;;  %vm482_vm3 = vcmp.gt.s32.totalorder %v481_v5, 0  ;;  %v265_v49 = vand.u32 8388607, %v2370_v14  ;;  %v286_v54 = vor.u32 %v285_v20, %v284_v18 }
  0x57   :  { %v457_v33 = vmul.f32 %v1538_v23, %v1515_v44  ;;  %v185_v57 = vshrl.u32 %v1509_v50, 16  ;;  %v194_v58 = vadd.s32 %v193_v25, %v183_v22  ;;  %v289_v63 = vor.u32 %v288_v35, %v287_v29 }
  0x58   :  { %vm293_vm4 = vcmp.lt.s32.totalorder %v1532_v32, 4  ;;  %v119_v55 = vshrl.u32 %v2384_v30, %v1432_v28  ;;  %v163_v6 = vshrl.u32 %v1512_v41, 16  ;;  %v172_v8 = vadd.s32 %v171_v39, %v161_v37 }
  0x59   :  { %v483_v10 = vsel %vm482_vm3, %v481_v5, 0  ;;  %v140_v59 = vsel %vm138_vm11, %v1462_v53, 2102212464  ;;  %v1564_v11 = vor.u32 %v276_v40, %v275_v15  ;;  %v1566_v12 = vor.u32 %v279_v43, %v278_v42 }
  0x5a   :  { %v1568_v18 = vor.u32 %v282_v24, %v281_v45  ;;  %v266_v20 = vor.u32 8388608, %v265_v49  ;;  %vm290_vm5 = vcmp.lt.s32.totalorder %v1532_v32, 1  ;;  %vm292_vm6 = vcmp.lt.s32.totalorder %v1532_v32, 3 }
  0x5b   :  { %v299_v28 = vsel %vm293_vm4, %v286_v54, 920167782  ;;  %v195_v41 = vadd.s32 %v194_v58, %v185_v57  ;;  %v303_v5 = vsel %vm293_vm4, %v289_v63, 1326507024  ;;  %v485_v22 = vand.u32 31, %v483_v10 }
  0x5c   :  { %v139_v53 = vsel %vm135_vm9, %v119_v55, %v1458_v51  ;;  %v141_v15 = vsel %vm137_vm12, %v1460_v52, %v140_v59  ;;  %v1582_v25 = vadd.s32 %v172_v8, %v163_v6  ;;  %v1587_v29 = vadd.s32 %v1518_v48, %v184_v46 }
  0x5d   :  { %vm291_vm7 = vcmp.lt.s32.totalorder %v1532_v32, 2  ;;  %v298_v35 = vsel %vm290_vm5, %v1564_v11, %v1566_v12  ;;  %v300_v51 = vsel %vm292_vm6, %v1568_v18, %v299_v28  ;;  %v458_v52 = vmul.f32 %v1538_v23, %v457_v33 }
  0x5e   :  { %v302_v50 = vsel %vm290_vm5, %v1566_v12, %v1568_v18  ;;  %v304_v46 = vsel %vm292_vm6, %v286_v54, %v303_v5  ;;  %v1604_v48 = vshll.u32 %v266_v20, 8  ;;  %v2371_v37 = vand.u32 2147483647, %v1503_v27 }
  0x5f   :  { %v142_v39 = vsel %vm136_vm13, %v139_v53, %v141_v15  ;;  %v199_v40 = vadd.s32 1, %v195_v41  ;;  %v1609_v42 = vsub.s32 32, %v485_v22  ;;  %vm198_vm8 = vc.u32 %v1582_v25, %v1587_v29 }
  0x60   :  { %v1615_v43 = vsel %vm291_vm7, %v298_v35, %v300_v51  ;;  %v1619_v45 = vsel %vm291_vm7, %v302_v50, %v304_v46  ;;  %vm462_vm9 = vweird.f32 %v1515_v44  ;;  %v196_v24 = vmul.u32 %v1466_v56, %v142_v39 }
  0x61   :  { %v307_v26 = vand.u32 65535, %v1604_v48  ;;  %v459_v49 = vmul.f32 0.5, %v458_v52  ;;  %v478_v54 = vand.u32 8388607, %v2371_v37  ;;  %v200_v33 = vsel %vm198_vm8, %v199_v40, %v195_v41 }
  0x62   :  { %v332_v57 = vshrl.u32 %v1615_v43, 16  ;;  %v497_v58 = vshll.u32 %v2377_v36, %v485_v22  ;;  %v498_v63 = vshrl.u32 %v2375_v38, %v1609_v42  ;;  %v310_v55 = vshrl.u32 %v1619_v45, 16 }
  0x63   :  { %v1631_v6 = vshrl.u32 %v483_v10, 5  ;;  %v488_v56 = vshll.u32 %v2384_v30, %v485_v22  ;;  %v491_v8 = vshll.u32 %v2381_v31, %v485_v22  ;;  %v489_v59 = vshrl.u32 %v2381_v31, %v1609_v42 }
  0x64   :  { %v492_v20 = vshrl.u32 %v2379_v34, %v1609_v42  ;;  %v494_v28 = vshll.u32 %v2379_v34, %v485_v22  ;;  %v495_v41 = vshrl.u32 %v2377_v36, %v1609_v42  ;;  %v1642_v5 = vadd.s32 %v200_v33, %v196_v24 }
  0x65   :  { %v460_v53 = vsub.f32 1.5, %v459_v49  ;;  %v500_v10 = vshll.u32 %v2375_v38, %v485_v22  ;;  %v501_v15 = vshrl.u32 %v2373_v47, %v1609_v42  ;;  %v308_v35 = vshrl.u32 %v1604_v48, 16 }
  0x66   :  { %v331_v51 = vand.u32 65535, %v1615_v43  ;;  %v479_v52 = vor.u32 8388608, %v478_v54  ;;  %v499_v50 = vor.u32 %v498_v63, %v497_v58  ;;  %v309_v46 = vand.u32 65535, %v1619_v45 }
  0x67   :  { %v1652_v39 = vmul.u32 %v310_v55, %v307_v26  ;;  %v1654_v40 = vmul.u32 %v332_v57, %v307_v26  ;;  %vm463_vm10 = vweird.f32 %v1538_v23  ;;  %v1657_v22 = vor.u32 %v489_v59, %v488_v56 }
  0x68   :  { %v1659_v24 = vor.u32 %v492_v20, %v491_v8  ;;  %v1661_v49 = vor.u32 %v495_v41, %v494_v28  ;;  %vm506_vm11 = vcmp.lt.s32.totalorder %v1631_v6, 4  ;;  %v202_v43 = vadd.s32 536870912, %v1642_v5  ;;  %vm464_vm14 = vmor %vm462_vm9, %vm463_vm10 }
  0x69   :  { %v502_v54 = vor.u32 %v501_v15, %v500_v10  ;;  %vm503_vm12 = vcmp.lt.s32.totalorder %v1631_v6, 1  ;;  %vm505_vm13 = vcmp.lt.s32.totalorder %v1631_v6, 3  ;;  %v1667_v33 = vmul.u32 %v331_v51, %v308_v35 }
  0x6a   :  { %v461_v58 = vmul.f32 %v1538_v23, %v460_v53  ;;  %v512_v63 = vsel %vm506_vm11, %v499_v50, 920167782  ;;  %v1672_v56 = vshll.u32 %v479_v52, 8  ;;  %v311_v8 = vmul.u32 %v309_v46, %v307_v26 }
  0x6b   :  { %v333_v59 = vmul.u32 %v331_v51, %v307_v26  ;;  %v337_v20 = vshll.u32 %v1654_v40, 16  ;;  %vm504_vm15 = vcmp.lt.s32.totalorder %v1631_v6, 2  ;;  %v511_v28 = vsel %vm503_vm12, %v1657_v22, %v1659_v24 }
  0x6c   :  { %v513_v41 = vsel %vm505_vm13, %v1661_v49, %v512_v63  ;;  %v515_v26 = vsel %vm503_vm12, %v1659_v24, %v1661_v49  ;;  %v1691_v53 = vshrl.u32 %v202_v43, 30  ;;  %v1693_v10 = vmul.u32 %v309_v46, %v308_v35 }
  0x6d   :  { %v315_v15 = vshll.u32 %v1652_v39, 16  ;;  %v516_v51 = vsel %vm506_vm11, %v502_v54, 1326507024  ;;  %v2383_v52 = vshll.u32 %v1667_v33, 16  ;;  %v1700_v14 = vsel %vm464_vm14, %v1538_v23, %v461_v58 }
  0x6e   :  { %2397 = vst [vmem:[#allocation13_spill] sm:$0xff] %v1700_v14  ;;  %v517_v63 = vsel %vm505_vm13, %v499_v50, %v516_v51  ;;  %v520_v37 = vand.u32 65535, %v1672_v56  ;;  %vm341_vm0 = vc.u32 %v333_v59, %v337_v20  ;;  %v1705_v43 = vadd.s32 %v337_v20, %v333_v59 }
  0x6f   :  { %v514_v46 = vsel %vm504_vm15, %v511_v28, %v513_v41  ;;  %v518_v13 = vsel %vm504_vm15, %v515_v26, %v517_v63  ;;  %v336_v54 = vmul.u32 %v332_v57, %v308_v35  ;;  %v521_v47 = vshrl.u32 %v1672_v56, 16 }
  0x70   :  { %v522_v38 = vand.u32 65535, %v518_v13  ;;  %v523_v23 = vshrl.u32 %v518_v13, 16  ;;  %v204_v58 = vshll.u32 %v1691_v53, 30  ;;  %v317_v50 = vshll.u32 %v1693_v10, 16 }
  0x71   :  { %vm319_vm1 = vc.u32 %v311_v8, %v315_v15  ;;  %v321_v51 = vadd.s32 %v315_v15, %v311_v8  ;;  %v342_v59 = vsel %vm341_vm0, 1, %v2388_v62  ;;  %v467_v20 = vmul.f32 %v1700_v14, %v1515_v44 }
  0x72   :  { %v525_v28 = vmul.u32 %v523_v23, %v520_v37  ;;  %v545_v41 = vshrl.u32 %v514_v46, 16  ;;  %v274_v57 = vshrl.u32 %v2384_v30, %v1527_v9  ;;  %v314_v13 = vmul.u32 %v310_v55, %v308_v35 }
  0x73   :  { %vm345_vm2 = vc.u32 %v1705_v43, %v2383_v52  ;;  %v524_v26 = vmul.u32 %v522_v38, %v520_v37  ;;  %v320_v8 = vsel %vm319_vm1, 1, %v2388_v62  ;;  %v1725_v15 = vmul.u32 %v522_v38, %v521_v47 }
  0x74   :  { %v528_v63 = vshll.u32 %v525_v28, 16  ;;  %v1728_v44 = vsub.s32 %v1642_v5, %v204_v58  ;;  %vm323_vm3 = vc.u32 %v321_v51, %v317_v50  ;;  %v344_v36 = vadd.s32 %v342_v59, %v336_v54 }
  0x75   :  { %v544_v34 = vand.u32 65535, %v514_v46  ;;  %v346_v9 = vsel %vm345_vm2, 1, %v2388_v62  ;;  %v1733_v45 = vmul.f32 %v468_v17, %v467_v20  ;;  %v547_v55 = vmul.u32 %v545_v41, %v520_v37 }
  0x76   :  { %v294_v35 = vsel %vm290_vm5, %v274_v57, %v1564_v11  ;;  %v322_v31 = vadd.s32 %v320_v8, %v314_v13  ;;  %v527_v38 = vmul.u32 %v523_v23, %v521_v47  ;;  %vm532_vm8 = vc.u32 %v524_v26, %v528_v63 }
  0x77   :  { %v295_v5 = vsel %vm293_vm4, %v1568_v18, 2102212464  ;;  %v324_v54 = vsel %vm323_vm3, 1, %v2388_v62  ;;  %v530_v46 = vshll.u32 %v1725_v15, 16  ;;  %v533_v58 = vsel %vm532_vm8, 1, %v2388_v62 }
  0x78   :  { %v207_v17 = vsub.s32 0, %v1728_v44  ;;  %v338_v50 = vshrl.u32 %v1654_v40, 16  ;;  %v348_v51 = vadd.s32 %v346_v9, %v344_v36  ;;  %v548_v59 = vmul.u32 %v544_v34, %v521_v47 }
  0x79   :  { %vm206_vm5 = vcmp.lt.s32.totalorder %v1728_v44, 0  ;;  %v534_v11 = vadd.s32 %v528_v63, %v524_v26  ;;  %v546_v23 = vmul.u32 %v544_v34, %v520_v37  ;;  %v550_v20 = vshll.u32 %v547_v55, 16 }
  0x7a   :  { %v296_v18 = vsel %vm292_vm6, %v1566_v12, %v295_v5  ;;  %v316_v57 = vshrl.u32 %v1652_v39, 16  ;;  %v326_v13 = vadd.s32 %v324_v54, %v322_v31  ;;  %v535_v8 = vadd.s32 %v533_v58, %v527_v38 }
  0x7b   :  { %v318_v52 = vshrl.u32 %v1693_v10, 16  ;;  %v529_v30 = vshrl.u32 %v525_v28, 16  ;;  %vm536_vm4 = vc.u32 %v534_v11, %v530_v46  ;;  %v549_v40 = vmul.u32 %v545_v41, %v521_v47 }
  0x7c   :  { %v208_v36 = vsel %vm206_vm5, %v207_v17, %v1728_v44  ;;  %v340_v9 = vshrl.u32 %v1667_v33, 16  ;;  %v537_v34 = vsel %vm536_vm4, 1, %v2388_v62  ;;  %v552_v37 = vshll.u32 %v548_v59, 16 }
  0x7d   :  { %v349_v26 = vadd.s32 %v348_v51, %v338_v50  ;;  %v2398_v63 = vmov 683565275   ;;  %v539_v5 = vadd.s32 %v537_v34, %v535_v8  ;;  %vm554_vm6 = vc.u32 %v546_v23, %v550_v20 }
  0x7e   :  { %v487_v12 = vshrl.u32 %v2398_v63, %v1609_v42  ;;  %v327_v31 = vadd.s32 %v326_v13, %v316_v57  ;;  %v508_v39 = vsel %vm506_vm11, %v1661_v49, 2102212464  ;;  %v555_v47 = vsel %vm554_vm6, 1, %v2388_v62 }
  0x7f   :  { %v556_v10 = vadd.s32 %v550_v20, %v546_v23  ;;  %v209_v28 = vclz %v208_v36  ;;  %v531_v41 = vshrl.u32 %v1725_v15, 16  ;;  %v540_v38 = vadd.s32 %v539_v5, %v529_v30 }
  0x80   :  { %v557_v54 = vadd.s32 %v555_v47, %v549_v40  ;;  %v2399_v46 = vshll.u32 %v1667_v33, 16  ;;  %v551_v42 = vshrl.u32 %v547_v55, 16  ;;  %v629_v17 = vand.u32 2139095040, %v1733_v45 }
  0x81   :  { %vm558_vm9 = vc.u32 %v556_v10, %v552_v37  ;;  %v350_v50 = vadd.s32 %v349_v26, %v340_v9  ;;  %v507_v49 = vsel %vm503_vm12, %v487_v12, %v1657_v22  ;;  %v509_v15 = vsel %vm505_vm13, %v1659_v24, %v508_v39 }
  0x82   :  { %v1765_v58 = vadd.s32 %v1705_v43, %v2399_v46  ;;  %v559_v30 = vsel %vm558_vm9, 1, %v2388_v62  ;;  %v1775_v51 = vadd.s32 %v327_v31, %v318_v52  ;;  %v553_v33 = vshrl.u32 %v548_v59, 16 }
  0x83   :  { %v561_v43 = vadd.s32 %v559_v30, %v557_v54  ;;  %v630_v11 = vshrl.u32 %v629_v17, 23  ;;  %v1183_v55 = vadd.s32 4294967294, %v209_v28  ;;  %v1777_v23 = vadd.s32 %v540_v38, %v531_v41 }
  0x84   :  { %v1779_v20 = vadd.s32 %v556_v10, %v552_v37  ;;  %v510_v57 = vsel %vm504_vm15, %v507_v49, %v509_v15  ;;  %v297_v24 = vsel %vm291_vm7, %v294_v35, %v296_v18  ;;  %v354_v8 = vadd.s32 1, %v350_v50 }
  0x85   :  { %v562_v22 = vadd.s32 %v561_v43, %v551_v42  ;;  %v1197_v13 = vadd.s32 4294967169, %v630_v11  ;;  %vm353_vm10 = vc.u32 %v1775_v51, %v1765_v58  ;;  %vm1184_vm11 = vcmp.lt.s32.totalorder %v1183_v55, 0 }
  0x86   :  { %v564_v40 = vmul.u32 %v1672_v56, %v510_v57  ;;  %vm566_vm12 = vc.u32 %v1777_v23, %v1779_v20  ;;  %v351_v6 = vmul.u32 %v1604_v48, %v297_v24  ;;  %v355_v9 = vsel %vm353_vm10, %v354_v8, %v350_v50 }
  0x87   :  { %v563_v52 = vadd.s32 %v562_v22, %v553_v33  ;;  %v636_v59 = vadd.s32 1, %v1197_v13  ;;  %v212_v34 = vsel %vm1184_vm11, 0, %v1183_v55  ;;  %v2387_v5 = vand.u32 2147483647, %v1733_v45 }
  0x88   :  { %v356_v37 = vadd.s32 %v355_v9, %v351_v6  ;;  %v217_v12 = vsub.s32 4294967266, %v212_v34  ;;  %v197_v56 = vadd.s32 %v1587_v29, %v1582_v25  ;;  %v213_v31 = vsub.s32 32, %v212_v34 }
  0x89   :  { %v567_v36 = vadd.s32 1, %v563_v52  ;;  %vm637_vm13 = vcmp.gt.s32.totalorder %v636_v59, 0  ;;  %v214_v10 = vshll.u32 %v1728_v44, %v212_v34  ;;  %v633_v41 = vand.u32 8388607, %v2387_v5 }
  0x8a   :  { %v638_v18 = vsel %vm637_vm13, %v636_v59, 0  ;;  %v357_v48 = vadd.s32 536870912, %v356_v37  ;;  %v218_v28 = vadd.s32 127, %v217_v12  ;;  %v215_v38 = vshrl.u32 %v197_v56, %v213_v31 }
  0x8b   :  { %v568_v32 = vsel %vm566_vm12, %v567_v36, %v563_v52  ;;  %v640_v26 = vand.u32 31, %v638_v18  ;;  %v2400_v42 = vmov 2475754826   ;;  %v2401_v17 = vmov 2131351028  }
  0x8c   :  { %v569_v35 = vadd.s32 %v568_v32, %v564_v40  ;;  %v2402_v49 = vmov 2102212464   ;;  %v2403_v44 = vmov 920167782   ;;  %v1812_v33 = vshrl.u32 %v357_v48, 30 }
  0x8d   :  { %v1794_v47 = vsub.s32 32, %v640_v26  ;;  %v643_v46 = vshll.u32 %v2398_v63, %v640_v26  ;;  %v646_v25 = vshll.u32 %v2400_v42, %v640_v26  ;;  %v652_v15 = vshll.u32 %v2402_v49, %v640_v26 }
  0x8e   :  { %v570_v39 = vadd.s32 536870912, %v569_v35  ;;  %v1814_v43 = vshrl.u32 %v638_v18, 5  ;;  %v649_v11 = vshll.u32 %v2401_v17, %v640_v26  ;;  %v219_v57 = vshll.u32 %v218_v28, 23 }
  0x8f   :  { %v644_v29 = vshrl.u32 %v2400_v42, %v1794_v47  ;;  %v647_v50 = vshrl.u32 %v2401_v17, %v1794_v47  ;;  %v653_v30 = vshrl.u32 %v2403_v44, %v1794_v47  ;;  %v650_v55 = vshrl.u32 %v2402_v49, %v1794_v47 }
  0x90   :  { %v1801_v54 = vshrl.u32 %v570_v39, 30  ;;  %v634_v22 = vor.u32 8388608, %v633_v41  ;;  %v655_v13 = vshll.u32 %v2403_v44, %v640_v26  ;;  %v2404_v24 = vmov 1326507024  }
  0x91   :  { %v656_v8 = vshrl.u32 %v2404_v24, %v1794_v47  ;;  %v216_v52 = vor.u32 %v215_v38, %v214_v10  ;;  %v1825_v40 = vor.u32 %v644_v29, %v643_v46  ;;  %v1827_v6 = vor.u32 %v647_v50, %v646_v25 }
  0x92   :  { %v572_v59 = vshll.u32 %v1801_v54, 30  ;;  %v654_v36 = vor.u32 %v653_v30, %v652_v15  ;;  %v794_v9 = vstv %s1796_s28  ;;  %v651_v34 = vor.u32 %v650_v55, %v649_v11 }
  0x93   :  { %v657_v32 = vor.u32 %v656_v8, %v655_v13  ;;  %vm658_vm7 = vcmp.lt.s32.totalorder %v1814_v43, 1  ;;  %vm661_vm14 = vcmp.lt.s32.totalorder %v1814_v43, 4  ;;  %v220_v18 = vor.u32 4788187, %v219_v57 }
  0x94   :  { %v359_v26 = vshll.u32 %v1812_v33, 30  ;;  %vm660_vm15 = vcmp.lt.s32.totalorder %v1814_v43, 3  ;;  %v1834_v12 = vshll.u32 %v634_v22, 8  ;;  %v223_v56 = vcvt.s32.f32 %v216_v52 }
  0x95   :  { %v1836_v31 = vsub.s32 %v569_v35, %v572_v59  ;;  %vm659_vm0 = vcmp.lt.s32.totalorder %v1814_v43, 2  ;;  %v666_v39 = vsel %vm658_vm7, %v1825_v40, %v1827_v6  ;;  %v667_v48 = vsel %vm661_vm14, %v654_v36, 920167782 }
  0x96   :  { %v795_v10 = vmul.f32 %v794_v9, %v1342_v0  ;;  %v668_v28 = vsel %vm660_vm15, %v651_v34, %v667_v48  ;;  %v670_v35 = vsel %vm658_vm7, %v1827_v6, %v651_v34  ;;  %v671_v41 = vsel %vm661_vm14, %v657_v32, 1326507024 }
  0x97   :  { %v799_v38 = vstv %s1819_s29  ;;  %v221_v46 = vand.u32 2147483647, %v220_v18  ;;  %v1856_v25 = vsub.s32 %v356_v37, %v359_v26  ;;  %v675_v29 = vand.u32 65535, %v1834_v12 }
  0x98   :  { %v796_v0 = vmul.f32 %v794_v9, %v1344_v1  ;;  %v575_v50 = vsub.s32 0, %v1836_v31  ;;  %v669_v15 = vsel %vm659_vm0, %v666_v39, %v668_v28  ;;  %v672_v30 = vsel %vm660_vm15, %v654_v36, %v671_v41 }
  0x99   :  { %v676_v11 = vshrl.u32 %v1834_v12, 16  ;;  %vm574_vm1 = vcmp.lt.s32.totalorder %v1836_v31, 0  ;;  %v673_v37 = vsel %vm659_vm0, %v670_v35, %v672_v30  ;;  %v797_v55 = vadd.f32 %v795_v10, %v1373_v19 }
  0x9a   :  { %v800_v57 = vmul.f32 %v799_v38, %v1346_v2  ;;  %v677_v1 = vand.u32 65535, %v673_v37  ;;  %v678_v22 = vshrl.u32 %v673_v37, 16  ;;  %v1871_v13 = vmul.f32 %v223_v56, %v221_v46 }
  0x9b   :  { %v362_v8 = vsub.s32 0, %v1856_v25  ;;  %v699_v52 = vand.u32 65535, %v669_v15  ;;  %v700_v59 = vshrl.u32 %v669_v15, 16  ;;  %v576_v36 = vsel %vm574_vm1, %v575_v50, %v1836_v31 }
  0x9c   :  { %v679_v9 = vmul.u32 %v677_v1, %v675_v29  ;;  %v680_v32 = vmul.u32 %v678_v22, %v675_v29  ;;  %v798_v18 = vadd.f32 %v796_v0, %v1376_v21  ;;  %v681_v26 = vmul.u32 %v677_v1, %v676_v11 }
  0x9d   :  { %v702_v39 = vmul.u32 %v700_v59, %v675_v29  ;;  %v801_v2 = vmul.f32 %v799_v38, %v1350_v3  ;;  %v802_v19 = vadd.f32 %v800_v57, %v797_v55  ;;  %v682_v56 = vmul.u32 %v678_v22, %v676_v11  ;;  %v1236_v22 = vld [vmem:[#allocation4 + $0x20] sm:$0xff] }
  0x9e   :  { %v683_v48 = vshll.u32 %v680_v32, 16  ;;  %v701_v10 = vmul.u32 %v699_v52, %v675_v29  ;;  %v804_v28 = vstv %s1853_s30  ;;  %vm361_vm2 = vcmp.lt.s32.totalorder %v1856_v25, 0 }
  0x9f   :  { %v577_v35 = vclz %v576_v36  ;;  %v642_v41 = vshrl.u32 %v2398_v63, %v1794_v47  ;;  %v685_v46 = vshll.u32 %v681_v26, 16  ;;  %v703_v50 = vmul.u32 %v699_v52, %v676_v11 }
  0xa0   :  { %vm687_vm3 = vc.u32 %v679_v9, %v683_v48  ;;  %v689_v21 = vadd.s32 %v683_v48, %v679_v9  ;;  %v704_v0 = vmul.u32 %v700_v59, %v676_v11  ;;  %v705_v15 = vshll.u32 %v702_v39, 16 }
  0xa1   :  { %v663_v3 = vsel %vm661_vm14, %v651_v34, 2102212464  ;;  %v688_v38 = vsel %vm687_vm3, 1, %v2388_v62  ;;  %v707_v30 = vshll.u32 %v703_v50, 16  ;;  %v803_v29 = vadd.f32 %v801_v2, %v798_v18  ;;  %v1237_v34 = vld [vmem:[#allocation4 + $0x28] sm:$0xff] }
  0xa2   :  { %v684_v37 = vshrl.u32 %v680_v32, 16  ;;  %v690_v55 = vadd.s32 %v688_v38, %v682_v56  ;;  %vm691_vm8 = vc.u32 %v689_v21, %v685_v46  ;;  %vm709_vm5 = vc.u32 %v701_v10, %v705_v15 }
  0xa3   :  { %v692_v47 = vsel %vm691_vm8, 1, %v2388_v62  ;;  %v710_v57 = vsel %vm709_vm5, 1, %v2388_v62  ;;  %v711_v1 = vadd.s32 %v705_v15, %v701_v10  ;;  %v805_v11 = vmul.f32 %v1236_v22, %v804_v28 }
  0xa4   :  { %v686_v52 = vshrl.u32 %v681_v26, 16  ;;  %v694_v59 = vadd.s32 %v692_v47, %v690_v55  ;;  %v712_v36 = vadd.s32 %v710_v57, %v704_v0  ;;  %v806_v9 = vmul.f32 %v1237_v34, %v804_v28 }
  0xa5   :  { %v706_v48 = vshrl.u32 %v702_v39, 16  ;;  %vm713_vm4 = vc.u32 %v711_v1, %v707_v30  ;;  %v807_v18 = vadd.f32 %v805_v11, %v802_v19  ;;  %v809_v32 = vstv %s1876_s3 }
  0xa6   :  { %v662_v2 = vsel %vm658_vm7, %v642_v41, %v1825_v40  ;;  %v695_v56 = vadd.s32 %v694_v59, %v684_v37  ;;  %v714_v46 = vsel %vm713_vm4, 1, %v2388_v62  ;;  %v808_v21 = vadd.f32 %v806_v9, %v803_v29 }
  0xa7   :  { %v664_v26 = vsel %vm660_vm15, %v1827_v6, %v663_v3  ;;  %v708_v10 = vshrl.u32 %v703_v50, 16  ;;  %v716_v0 = vadd.s32 %v714_v46, %v712_v36  ;;  %v810_v15 = vadd.f32 %v809_v32, %v807_v18 }
  0xa8   :  { %v1195_v28 = vadd.s32 4294967294, %v577_v35  ;;  %v1896_v39 = vadd.s32 %v695_v56, %v686_v52  ;;  %v1898_v19 = vadd.s32 %v711_v1, %v707_v30  ;;  %v811_v38 = vadd.f32 %v809_v32, %v808_v21 }
  0xa9   :  { %v717_v55 = vadd.s32 %v716_v0, %v706_v48  ;;  %v812_v47 = vmax.f32 %v810_v15, 1e-08  ;;  %v225_v40 = vxor.u32 2147483648, %v1871_v13  ;;  %v363_v41 = vsel %vm361_vm2, %v362_v8, %v1856_v25 }
  0xaa   :  { %v665_v6 = vsel %vm659_vm0, %v662_v2, %v664_v26  ;;  %v1908_v35 = vmax.f32 %v811_v38, 1e-08  ;;  %vm105_vm6 = vcmp.lt.s32.totalorder %v1409_v4, 0  ;;  %vm1196_vm9 = vcmp.lt.s32.totalorder %v1195_v28, 0 }
  0xab   :  { %v718_v50 = vadd.s32 %v717_v55, %v708_v10  ;;  %1232 = vrsqrt.f32 %v812_v47  ;;  %vm721_vm10 = vc.u32 %v1896_v39, %v1898_v19  ;;  %v364_v3 = vclz %v363_v41 }
  0xac   :  { %1234 = vrsqrt.f32 %v1908_v35  ;;  %v719_v29 = vmul.u32 %v1834_v12, %v665_v6  ;;  %v2405_v8 = vand.u32 2147483647, %v1409_v4  ;;  %v226_v37 = vsel %vm105_vm6, %v225_v40, %v1871_v13 }
  0xad   :  { %v722_v30 = vadd.s32 1, %v718_v50  ;;  %v580_v57 = vsel %vm1196_vm9, 0, %v1195_v28  ;;  %v1186_v11 = vadd.s32 4294967294, %v364_v3  ;;  %v565_v18 = vadd.s32 %v1779_v20, %v1777_v23 }
  0xae   :  { %vm1917_vm11 = vcmp.le.f32.partialorder %v2405_v8, 0.7853982  ;;  %v585_v12 = vsub.s32 4294967266, %v580_v57  ;;  %v581_v32 = vsub.s32 32, %v580_v57  ;;  %vm820_vm13 = vweird.f32 %v812_v47 }
  0xaf   :  { %v723_v1 = vsel %vm721_vm10, %v722_v30, %v718_v50  ;;  %v1927_v52 = vsel %vm1917_vm11, %v1409_v4, %v226_v37  ;;  %vm1187_vm12 = vcmp.lt.s32.totalorder %v1186_v11, 0  ;;  %v582_v28 = vshll.u32 %v1836_v31, %v580_v57 }
  0xb0   :  { %v724_v59 = vadd.s32 %v723_v1, %v719_v29  ;;  %v1931_v48 = vmul.f32 %v1927_v52, %v1927_v52  ;;  %v586_v2 = vadd.s32 127, %v585_v12  ;;  %v367_v10 = vsel %vm1187_vm12, 0, %v1186_v11 }
  0xb1   :  { %v1233_v22 = vpop.eup %1232  ;;  %v583_v38 = vshrl.u32 %v565_v18, %v581_v32  ;;  %v227_v41 = vsub.s32 4, %v1691_v53  ;;  %v372_v3 = vsub.s32 4294967266, %v367_v10  ;;  %vm830_vm15 = vweird.f32 %v1908_v35 }
  0xb2   :  { %v815_v36 = vmul.f32 %v1233_v22, %v812_v47  ;;  %v1235_v34 = vpop.eup %1234  ;;  %v725_v56 = vadd.s32 536870912, %v724_v59  ;;  %vm821_vm7 = vweird.f32 %v1233_v22  ;;  %v232_v26 = vmul.f32 -0.001358992, %v1931_v48 }
  0xb3   :  { %v825_v13 = vmul.f32 %v1235_v34, %v1908_v35  ;;  %v587_v55 = vshll.u32 %v586_v2, 23  ;;  %vm822_vm14 = vmor %vm820_vm13, %vm821_vm7  ;;  %v239_v50 = vmul.f32 -0.00019511016, %v1931_v48  ;;  %vm831_vm0 = vweird.f32 %v1235_v34 }
  0xb4   :  { %v816_v9 = vmul.f32 %v1233_v22, %v815_v36  ;;  %v1940_v40 = vshrl.u32 %v725_v56, 30  ;;  %v233_v6 = vadd.f32 0.041655596, %v232_v26  ;;  %v836_v29 = vstv %s1933_s4  ;;  %vm832_vm1 = vmor %vm830_vm15, %vm831_vm0 }
  0xb5   :  { %v826_v21 = vmul.f32 %v1235_v34, %v825_v13  ;;  %v584_v31 = vor.u32 %v583_v38, %v582_v28  ;;  %v588_v8 = vor.u32 4788187, %v587_v55  ;;  %v228_v11 = vsel %vm105_vm6, %v227_v41, %v1691_v53 }
  0xb6   :  { %v817_v46 = vmul.f32 0.5, %v816_v9  ;;  %v727_v37 = vshll.u32 %v1940_v40, 30  ;;  %v240_v12 = vadd.f32 0.008332121, %v239_v50  ;;  %v352_v9 = vadd.s32 %v1765_v58, %v1775_v51 }
  0xb7   :  { %v827_v15 = vmul.f32 0.5, %v826_v21  ;;  %v368_v13 = vsub.s32 32, %v367_v10  ;;  %v373_v18 = vadd.s32 127, %v372_v3  ;;  %v589_v32 = vand.u32 2147483647, %v588_v8 }
  0xb8   :  { %v818_v0 = vsub.f32 1.5, %v817_v46  ;;  %v591_v2 = vcvt.s32.f32 %v584_v31  ;;  %v1958_v56 = vsub.s32 %v724_v59, %v727_v37  ;;  %v230_v53 = vsel %vm1917_vm11, 0, %v228_v11 }
  0xb9   :  { %v828_v20 = vsub.f32 1.5, %v827_v15  ;;  %v241_v21 = vmul.f32 %v240_v12, %v1931_v48  ;;  %v369_v26 = vshll.u32 %v1856_v25, %v367_v10  ;;  %v370_v15 = vshrl.u32 %v352_v9, %v368_v13 }
  0xba   :  { %v819_v23 = vmul.f32 %v1233_v22, %v818_v0  ;;  %v374_v58 = vshll.u32 %v373_v18, 23  ;;  %v592_v28 = vmul.f32 %v591_v2, %v589_v32  ;;  %v730_v38 = vsub.s32 0, %v1958_v56 }
  0xbb   :  { %v829_v1 = vmul.f32 %v1235_v34, %v828_v20  ;;  %v247_v55 = vadd.s32 3, %v230_v53  ;;  %vm729_vm2 = vcmp.lt.s32.totalorder %v1958_v56, 0  ;;  %v371_v25 = vor.u32 %v370_v15, %v369_v26 }
  0xbc   :  { %v1944_v30 = vsel %vm822_vm14, %v1233_v22, %v819_v23  ;;  %v234_v22 = vmul.f32 %v233_v6, %v1931_v48  ;;  %v242_v23 = vadd.f32 -0.16666654, %v241_v21  ;;  %v375_v10 = vor.u32 4788187, %v374_v58 }
  0xbd   :  { %2408 = vst [vmem:[#allocation14_spill] sm:$0xff] %v1944_v30  ;;  %v834_v57 = vmul.f32 %v1944_v30, %v812_v47  ;;  %v1960_v47 = vsel %vm832_vm1, %v1235_v34, %v829_v1  ;;  %v593_v6 = vxor.u32 2147483648, %v592_v28  ;;  %v731_v50 = vsel %vm729_vm2, %v730_v38, %v1958_v56 }
  0xbe   :  { %2409 = vst [vmem:[#allocation15_spill] sm:$0xff] %v1960_v47  ;;  %v235_v0 = vadd.f32 -0.4999988, %v234_v22  ;;  %v835_v59 = vmul.f32 %v1960_v47, %v1908_v35  ;;  %v1978_v31 = vand.u32 3, %v247_v55  ;;  %vm473_vm3 = vcmp.lt.s32.totalorder %v1503_v27, 0 }
  0xbf   :  { %v1953_v36 = vmul.f32 %v836_v29, %v834_v57  ;;  %v243_v8 = vmul.f32 %v242_v23, %v1931_v48  ;;  %v2410_v57 = vand.u32 2147483647, %v1503_v27  ;;  %v376_v11 = vand.u32 2147483647, %v375_v10 }
  0xc0   :  { %v236_v20 = vmul.f32 %v235_v0, %v1931_v48  ;;  %v1974_v3 = vmul.f32 %v836_v29, %v835_v59  ;;  %v378_v12 = vcvt.s32.f32 %v371_v25  ;;  %v732_v22 = vclz %v731_v50 }
  0xc1   :  { %v842_v46 = vand.u32 2139095040, %v1953_v36  ;;  %v2386_v34 = vand.u32 2147483647, %v1953_v36  ;;  %vm1985_vm5 = vcmp.le.f32.partialorder %v2410_v57, 0.7853982  ;;  %v594_v18 = vsel %vm473_vm3, %v593_v6, %v592_v28 }
  0xc2   :  { %v1989_v13 = vadd.f32 1.0, %v236_v20  ;;  %v997_v48 = vand.u32 2139095040, %v1974_v3  ;;  %v1998_v26 = vadd.f32 1.0, %v243_v8  ;;  %v1198_v28 = vadd.s32 4294967294, %v732_v22 }
  0xc3   :  { %v843_v51 = vshrl.u32 %v842_v46, 23  ;;  %v846_v35 = vand.u32 8388607, %v2386_v34  ;;  %v2017_v8 = vmul.f32 %v378_v12, %v376_v11  ;;  %vm260_vm0 = vcmp.lt.s32.totalorder %v1419_v16, 0 }
  0xc4   :  { %vm1199_vm11 = vcmp.lt.s32.totalorder %v1198_v28, 0 }
  0xc5   :  { %v1206_v43 = vadd.s32 4294967169, %v843_v51  ;;  %v847_v32 = vor.u32 8388608, %v846_v35  ;;  %v2006_v51 = vsel %vm1985_vm5, %v1503_v27, %v594_v18 }
  0xc6   :  { %v2021_v57 = vmul.f32 %v2006_v51, %v2006_v51 }
  0xc7   :  { %v849_v41 = vadd.s32 1, %v1206_v43  ;;  %v2013_v20 = vshll.u32 %v847_v32, 8 }
  0xc8   :  { %v600_v11 = vmul.f32 -0.001358992, %v2021_v57 }
  0xc9   :  { %vm850_vm8 = vcmp.gt.s32.totalorder %v849_v41, 0  ;;  %v888_v32 = vand.u32 65535, %v2013_v20 }
  0xca   :  { %v851_v29 = vsel %vm850_vm8, %v849_v41, 0  ;;  %v998_v41 = vshrl.u32 %v997_v48, 23 }
  0xcb   :  { %v853_v9 = vand.u32 31, %v851_v29  ;;  %v1994_v2 = vshrl.u32 %v851_v29, 5  ;;  %v595_v29 = vsub.s32 4, %v1801_v54 }
  0xcd   :  { %v854_v46 = vsub.s32 32, %v853_v9  ;;  %v856_v53 = vshll.u32 %v2398_v63, %v853_v9  ;;  %v859_v21 = vshll.u32 %v2400_v42, %v853_v9  ;;  %v862_v0 = vshll.u32 %v2401_v17, %v853_v9 }
  0xce   :  { %v865_v15 = vshll.u32 %v2402_v49, %v853_v9  ;;  %v868_v58 = vshll.u32 %v2403_v44, %v853_v9  ;;  %vm871_vm4 = vcmp.lt.s32.totalorder %v1994_v2, 1  ;;  %vm873_vm6 = vcmp.lt.s32.totalorder %v1994_v2, 3 }
  0xcf   :  { %v857_v38 = vshrl.u32 %v2400_v42, %v854_v46  ;;  %v860_v59 = vshrl.u32 %v2401_v17, %v854_v46  ;;  %v863_v55 = vshrl.u32 %v2402_v49, %v854_v46  ;;  %v866_v43 = vshrl.u32 %v2403_v44, %v854_v46 }
  0xd0   :  { %v869_v23 = vshrl.u32 %v2404_v24, %v854_v46  ;;  %vm872_vm9 = vcmp.lt.s32.totalorder %v1994_v2, 2  ;;  %vm874_vm10 = vcmp.lt.s32.totalorder %v1994_v2, 4 }
  0xd1   :  { %v858_v25 = vor.u32 %v857_v38, %v856_v53  ;;  %v861_v10 = vor.u32 %v860_v59, %v859_v21  ;;  %v864_v6 = vor.u32 %v863_v55, %v862_v0  ;;  %v867_v50 = vor.u32 %v866_v43, %v865_v15 }
  0xd2   :  { %v870_v35 = vor.u32 %v869_v23, %v868_v58  ;;  %v889_v21 = vshrl.u32 %v2013_v20, 16  ;;  %v1209_v0 = vadd.s32 4294967169, %v998_v41  ;;  %v607_v15 = vmul.f32 -0.00019511016, %v2021_v57 }
  0xd3   :  { %v879_v22 = vsel %vm871_vm4, %v858_v25, %v861_v10  ;;  %v880_v9 = vsel %vm874_vm10, %v867_v50, 920167782  ;;  %v883_v18 = vsel %vm871_vm4, %v861_v10, %v864_v6  ;;  %v2042_v58 = vsel %vm1199_vm11, 0, %v1198_v28 }
  0xd4   :  { %v881_v12 = vsel %vm873_vm6, %v864_v6, %v880_v9  ;;  %v884_v53 = vsel %vm874_vm10, %v870_v35, 1326507024  ;;  %v2050_v43 = vsel %vm473_vm3, %v595_v29, %v1801_v54  ;;  %v2054_v41 = vadd.f32 0.041655596, %v600_v11 }
  0xd5   :  { %v882_v48 = vsel %vm872_vm9, %v879_v22, %v881_v12  ;;  %v885_v38 = vsel %vm873_vm6, %v867_v50, %v884_v53  ;;  %v720_v28 = vadd.s32 %v1898_v19, %v1896_v39  ;;  %v740_v50 = vsub.s32 4294967266, %v2042_v58 }
  0xd6   :  { %v912_v59 = vand.u32 65535, %v882_v48  ;;  %v886_v23 = vsel %vm872_vm9, %v883_v18, %v885_v38  ;;  %v913_v35 = vshrl.u32 %v882_v48, 16  ;;  %v1004_v34 = vadd.s32 1, %v1209_v0 }
  0xd7   :  { %v890_v22 = vand.u32 65535, %v886_v23  ;;  %v891_v9 = vshrl.u32 %v886_v23, 16  ;;  %v2059_v37 = vadd.f32 0.008332121, %v607_v15  ;;  %v855_v54 = vshrl.u32 %v2398_v63, %v854_v46 }
  0xd8   :  { %v915_v12 = vmul.u32 %v913_v35, %v888_v32  ;;  %v916_v53 = vmul.u32 %v912_v59, %v889_v21  ;;  %v736_v18 = vsub.s32 32, %v2042_v58  ;;  %v914_v48 = vmul.u32 %v912_v59, %v888_v32 }
  0xd9   :  { %v892_v29 = vmul.u32 %v890_v22, %v888_v32  ;;  %v893_v5 = vmul.u32 %v891_v9, %v888_v32  ;;  %v894_v11 = vmul.u32 %v890_v22, %v889_v21  ;;  %v876_v19 = vsel %vm874_vm10, %v864_v6, 2102212464 }
  0xda   :  { %v918_v38 = vshll.u32 %v915_v12, 16  ;;  %v895_v23 = vmul.u32 %v891_v9, %v889_v21  ;;  %v2067_v0 = vadd.s32 127, %v740_v50  ;;  %v920_v62 = vshll.u32 %v916_v53, 16 }
  0xdb   :  { %v896_v55 = vshll.u32 %v893_v5, 16  ;;  %v898_v15 = vshll.u32 %v894_v11, 16  ;;  %vm1005_vm12 = vcmp.gt.s32.totalorder %v1004_v34, 0  ;;  %v875_v46 = vsel %vm871_vm4, %v855_v54, %v858_v25 }
  0xdc   :  { %v917_v32 = vmul.u32 %v913_v35, %v889_v21  ;;  %v877_v59 = vsel %vm873_vm6, %v861_v10, %v876_v19  ;;  %v2413_v39 = vmov 0   ;;  %vm922_vm7 = vc.u32 %v914_v48, %v918_v38 }
  0xdd   :  { %vm900_vm13 = vc.u32 %v892_v29, %v896_v55  ;;  %v902_v22 = vadd.s32 %v896_v55, %v892_v29  ;;  %v924_v6 = vadd.s32 %v918_v38, %v914_v48  ;;  %v897_v9 = vshrl.u32 %v893_v5, 16 }
  0xde   :  { %v901_v47 = vsel %vm900_vm13, 1, %v2413_v39  ;;  %v1006_v50 = vsel %vm1005_vm12, %v1004_v34, 0  ;;  %v919_v30 = vshrl.u32 %v915_v12, 16  ;;  %v923_v61 = vsel %vm922_vm7, 1, %v2413_v39 }
  0xdf   :  { %v903_v14 = vadd.s32 %v901_v47, %v895_v23  ;;  %vm904_vm14 = vc.u32 %v902_v22, %v898_v15  ;;  %vm926_vm15 = vc.u32 %v924_v6, %v920_v62  ;;  %v899_v25 = vshrl.u32 %v894_v11, 16 }
  0xe0   :  { %v905_v7 = vsel %vm904_vm14, 1, %v2413_v39  ;;  %v925_v21 = vadd.s32 %v923_v61, %v917_v32  ;;  %v927_v35 = vsel %vm926_vm15, 1, %v2413_v39  ;;  %v738_v10 = vshrl.u32 %v720_v28, %v736_v18 }
  0xe1   :  { %v907_v55 = vadd.s32 %v905_v7, %v903_v14  ;;  %v878_v54 = vsel %vm872_vm9, %v875_v46, %v877_v59  ;;  %v994_v5 = vand.u32 2147483647, %v1974_v3  ;;  %v1008_v47 = vand.u32 31, %v1006_v50 }
  0xe2   :  { %v921_v34 = vshrl.u32 %v916_v53, 16  ;;  %v929_v48 = vadd.s32 %v927_v35, %v925_v21  ;;  %v2080_v38 = vshrl.u32 %v1006_v50, 5  ;;  %v2082_v12 = vadd.s32 %v924_v6, %v920_v62 }
  0xe3   :  { %v908_v29 = vadd.s32 %v907_v55, %v897_v9  ;;  %v2084_v19 = vsub.s32 32, %v1008_v47  ;;  %v1011_v7 = vshll.u32 %v2398_v63, %v1008_v47  ;;  %v1014_v61 = vshll.u32 %v2400_v42, %v1008_v47 }
  0xe4   :  { %v742_v14 = vshll.u32 %v2067_v0, 23  ;;  %v930_v28 = vadd.s32 %v929_v48, %v919_v30  ;;  %v1017_v18 = vshll.u32 %v2401_v17, %v1008_v47  ;;  %v1001_v53 = vand.u32 8388607, %v994_v5 }
  0xe5   :  { %v2089_v2 = vadd.s32 %v908_v29, %v899_v25  ;;  %v1012_v62 = vshrl.u32 %v2400_v42, %v2084_v19  ;;  %v1015_v11 = vshrl.u32 %v2401_v17, %v2084_v19  ;;  %v1020_v23 = vshll.u32 %v2402_v49, %v1008_v47 }
  0xe6   :  { %v931_v15 = vadd.s32 %v930_v28, %v921_v34  ;;  %v932_v0 = vmul.u32 %v2013_v20, %v878_v54  ;;  %v1018_v30 = vshrl.u32 %v2402_v49, %v2084_v19  ;;  %vm1026_vm1 = vcmp.lt.s32.totalorder %v2080_v38, 1 }
  0xe7   :  { %vm934_vm2 = vc.u32 %v2089_v2, %v2082_v12  ;;  %v2106_v46 = vor.u32 %v1012_v62, %v1011_v7  ;;  %v2108_v22 = vor.u32 %v1015_v11, %v1014_v61  ;;  %v1021_v42 = vshrl.u32 %v2403_v44, %v2084_v19 }
  0xe8   :  { %v935_v17 = vadd.s32 1, %v931_v15  ;;  %v2112_v32 = vor.u32 %v1018_v30, %v1017_v18  ;;  %v1023_v20 = vshll.u32 %v2403_v44, %v1008_v47  ;;  %v1024_v49 = vshrl.u32 %v2404_v24, %v2084_v19 }
  0xe9   :  { %v1002_v59 = vor.u32 8388608, %v1001_v53  ;;  %v1022_v6 = vor.u32 %v1021_v42, %v1020_v23  ;;  %vm1028_vm3 = vcmp.lt.s32.totalorder %v2080_v38, 3  ;;  %vm1029_vm8 = vcmp.lt.s32.totalorder %v2080_v38, 4 }
  0xea   :  { %v936_v9 = vsel %vm934_vm2, %v935_v17, %v931_v15  ;;  %v1025_v50 = vor.u32 %v1024_v49, %v1023_v20  ;;  %vm1027_vm4 = vcmp.lt.s32.totalorder %v2080_v38, 2  ;;  %v1034_v25 = vsel %vm1026_vm1, %v2106_v46, %v2108_v22 }
  0xeb   :  { %v602_v44 = vmul.f32 %v2054_v41, %v2021_v57  ;;  %v937_v55 = vadd.s32 %v936_v9, %v932_v0  ;;  %v1035_v24 = vsel %vm1029_vm8, %v1022_v6, 920167782  ;;  %v1038_v21 = vsel %vm1026_vm1, %v2108_v22, %v2112_v32 }
  0xec   :  { %v609_v35 = vmul.f32 %v2059_v37, %v2021_v57  ;;  %v2414_v54 = vshll.u32 %v1958_v56, %v2042_v58  ;;  %v1036_v41 = vsel %vm1028_vm3, %v2112_v32, %v1035_v24  ;;  %v1039_v29 = vsel %vm1029_vm8, %v1025_v50, 1326507024 }
  0xed   :  { %v938_v34 = vadd.s32 536870912, %v937_v55  ;;  %v1037_v48 = vsel %vm1027_vm4, %v1034_v25, %v1036_v41  ;;  %v1040_v7 = vsel %vm1028_vm3, %v1022_v6, %v1039_v29  ;;  %v2146_v61 = vshll.u32 %v1002_v59, 8 }
  0xee   :  { %v739_v47 = vor.u32 %v738_v10, %v2414_v54  ;;  %v743_v37 = vor.u32 4788187, %v742_v14  ;;  %v1041_v56 = vsel %vm1027_vm4, %v1038_v21, %v1040_v7  ;;  %v1067_v58 = vand.u32 65535, %v1037_v48 }
  0xef   :  { %v1068_v10 = vshrl.u32 %v1037_v48, 16  ;;  %v2150_v28 = vshrl.u32 %v938_v34, 30  ;;  %v1043_v18 = vand.u32 65535, %v2146_v61  ;;  %v1044_v53 = vshrl.u32 %v2146_v61, 16 }
  0xf0   :  { %v1045_v62 = vand.u32 65535, %v1041_v56  ;;  %v2156_v11 = vmul.f32 %v1998_v26, %v1927_v52  ;;  %v254_v23 = vxor.u32 2147483648, %v1989_v13  ;;  %v2415_v14 = vxor.u32 2147483648, %v2017_v8 }
  0xf1   :  { %v1046_v0 = vshrl.u32 %v1041_v56, 16  ;;  %v598_v30 = vsel %vm1985_vm5, 0, %v2050_v43  ;;  %v2169_v42 = vadd.f32 -0.4999988, %v602_v44  ;;  %v940_v17 = vshll.u32 %v2150_v28, 30 }
  0xf2   :  { %v2164_v15 = vsel %vm260_vm0, %v2415_v14, %v2017_v8  ;;  %v1049_v52 = vmul.u32 %v1045_v62, %v1044_v53  ;;  %v610_v26 = vadd.f32 -0.16666654, %v609_v35  ;;  %v1047_v20 = vmul.u32 %v1045_v62, %v1043_v18 }
  0xf3   :  { %v1048_v49 = vmul.u32 %v1046_v0, %v1043_v18  ;;  %v1070_v59 = vmul.u32 %v1068_v10, %v1043_v18  ;;  %v744_v6 = vand.u32 2147483647, %v743_v37  ;;  %v746_v9 = vcvt.s32.f32 %v739_v47 }
  0xf4   :  { %v2172_v50 = vsub.s32 %v937_v55, %v940_v17  ;;  %v1069_v8 = vmul.u32 %v1067_v58, %v1043_v18  ;;  %v1050_v25 = vmul.u32 %v1046_v0, %v1044_v53  ;;  %v1053_v21 = vshll.u32 %v1049_v52, 16 }
  0xf5   :  { %v1051_v24 = vshll.u32 %v1048_v49, 16  ;;  %v1071_v54 = vmul.u32 %v1067_v58, %v1044_v53  ;;  %v1072_v41 = vmul.u32 %v1068_v10, %v1044_v53  ;;  %v1073_v29 = vshll.u32 %v1070_v59, 16 }
  0xf6   :  { %vm942_vm6 = vcmp.lt.s32.totalorder %v2172_v50, 0  ;;  %v943_v44 = vsub.s32 0, %v2172_v50  ;;  %v2416_v35 = vand.u32 2147483647, %v1419_v16  ;;  %v1010_v55 = vshrl.u32 %v2398_v63, %v2084_v19 }
  0xf7   :  { %v1052_v47 = vshrl.u32 %v1048_v49, 16  ;;  %vm1055_vm10 = vc.u32 %v1047_v20, %v1051_v24  ;;  %v1057_v48 = vadd.s32 %v1051_v24, %v1047_v20  ;;  %v1075_v56 = vshll.u32 %v1071_v54, 16 }
  0xf8   :  { %vm2178_vm9 = vcmp.le.f32.partialorder %v2416_v35, 0.7853982  ;;  %v944_v7 = vsel %vm942_vm6, %v943_v44, %v2172_v50  ;;  %v1056_v37 = vsel %vm1055_vm10, 1, %v2413_v39  ;;  %vm1077_vm11 = vc.u32 %v1069_v8, %v1073_v29 }
  0xf9   :  { %v945_v58 = vclz %v944_v7  ;;  %v1058_v10 = vadd.s32 %v1056_v37, %v1050_v25  ;;  %vm1059_vm12 = vc.u32 %v1057_v48, %v1053_v21  ;;  %v1078_v18 = vsel %vm1077_vm11, 1, %v2413_v39 }
  0xfa   :  { %v1031_v53 = vsel %vm1029_vm8, %v2112_v32, 2102212464  ;;  %v1060_v63 = vsel %vm1059_vm12, 1, %v2413_v39  ;;  %v1079_v19 = vadd.s32 %v1073_v29, %v1069_v8  ;;  %v1080_v62 = vadd.s32 %v1078_v18, %v1072_v41 }
  0xfb   :  { %vm250_vm13 = vcmp.eq.s32.totalorder %v1978_v31, 0  ;;  %vm253_vm7 = vcmp.eq.s32.totalorder %v1978_v31, 2  ;;  %v747_v14 = vmul.f32 %v746_v9, %v744_v6  ;;  %v1207_v0 = vadd.s32 4294967294, %v945_v58 }
  0xfc   :  { %v1054_v17 = vshrl.u32 %v1049_v52, 16  ;;  %v1062_v20 = vadd.s32 %v1060_v63, %v1058_v10  ;;  %v933_v49 = vadd.s32 %v2082_v12, %v2089_v2  ;;  %v1030_v25 = vsel %vm1026_vm1, %v1010_v55, %v2106_v46 }
  0xfd   :  { %v1074_v32 = vshrl.u32 %v1070_v59, 16  ;;  %vm1081_vm14 = vc.u32 %v1079_v19, %v1075_v56  ;;  %vm1208_vm15 = vcmp.lt.s32.totalorder %v1207_v0, 0  ;;  %v1032_v8 = vsel %vm1028_vm3, %v2108_v22, %v1031_v53 }
  0xfe   :  { %v1063_v24 = vadd.s32 %v1062_v20, %v1052_v47  ;;  %v1082_v6 = vsel %vm1081_vm14, 1, %v2413_v39  ;;  %v948_v9 = vsel %vm1208_vm15, 0, %v1207_v0  ;;  %v1076_v52 = vshrl.u32 %v1071_v54, 16 }
  0xff   :  { %v2202_v21 = vadd.s32 %v1079_v19, %v1075_v56  ;;  %v1084_v44 = vadd.s32 %v1082_v6, %v1080_v62  ;;  %v949_v12 = vsub.s32 32, %v948_v9  ;;  %v950_v2 = vshll.u32 %v2172_v50, %v948_v9 }
 0x100   :  { %v953_v41 = vsub.s32 4294967266, %v948_v9  ;;  %v2205_v46 = vadd.s32 %v1063_v24, %v1054_v17  ;;  %v611_v59 = vmul.f32 %v610_v26, %v2021_v57  ;;  %v748_v29 = vxor.u32 2147483648, %v747_v14 }
 0x101   :  { %v1033_v22 = vsel %vm1027_vm4, %v1030_v25, %v1032_v8  ;;  %v1085_v35 = vadd.s32 %v1084_v44, %v1074_v32  ;;  %v251_v39 = vxor.u32 2147483648, %v2156_v11  ;;  %vm628_vm1 = vcmp.lt.s32.totalorder %v1733_v45, 0 }
 0x102   :  { %v951_v54 = vshrl.u32 %v933_v49, %v949_v12  ;;  %v954_v55 = vadd.s32 127, %v953_v41  ;;  %v2216_v50 = vsel %vm2178_vm9, %v1419_v16, %v2164_v15  ;;  %v615_v26 = vadd.s32 3, %v598_v30 }
 0x103   :  { %v2419_v38 = vand.u32 2147483647, %v1733_v45  ;;  %v1086_v48 = vadd.s32 %v1085_v35, %v1076_v52  ;;  %v1087_v56 = vmul.u32 %v2146_v61, %v1033_v22  ;;  %vm1089_vm3 = vc.u32 %v2205_v46, %v2202_v21 }
 0x104   :  { %v952_v7 = vor.u32 %v951_v54, %v950_v2  ;;  %v955_v37 = vshll.u32 %v954_v55, 23  ;;  %v604_v1 = vmul.f32 %v2169_v42, %v2021_v57  ;;  %v612_v43 = vadd.f32 1.0, %v611_v59 }
 0x105   :  { %vm2224_vm2 = vcmp.le.f32.partialorder %v2419_v38, 0.7853982  ;;  %v749_v15 = vsel %vm628_vm1, %v748_v29, %v747_v14  ;;  %v1090_v30 = vadd.s32 1, %v1086_v48  ;;  %vm249_vm5 = vcmp.lt.s32.totalorder %v1978_v31, 2 }
 0x106   :  { %v2422_v58 = vsub.s32 4, %v1812_v33  ;;  %v956_v61 = vor.u32 4788187, %v955_v37  ;;  %v959_v18 = vcvt.s32.f32 %v952_v7  ;;  %v252_v53 = vsel %vm250_vm13, %v1989_v13, %v251_v39 }
 0x107   :  { %v255_v57 = vsel %vm253_vm7, %v254_v23, %v2156_v11  ;;  %v2253_v42 = vmul.f32 %v2216_v50, %v2216_v50  ;;  %v1091_v63 = vsel %vm1089_vm3, %v1090_v30, %v1086_v48  ;;  %vm246_vm8 = vweird.f32 %v1409_v4 }
 0x108   :  { %v383_v10 = vsel %vm260_vm0, %v2422_v58, %v1812_v33  ;;  %v2259_v33 = vsel %vm2224_vm2, %v1733_v45, %v749_v15  ;;  %v957_v19 = vand.u32 2147483647, %v956_v61  ;;  %v1092_v62 = vadd.s32 %v1091_v63, %v1087_v56 }
 0x109   :  { %v385_v13 = vsel %vm2178_vm9, 0, %v383_v10  ;;  %v605_v14 = vadd.f32 1.0, %v604_v1  ;;  %v613_v11 = vmul.f32 %v612_v43, %v2006_v51  ;;  %v616_v23 = vand.u32 3, %v615_v26 }
 0x10a   :  { %v256_v0 = vsel %vm249_vm5, %v252_v53, %v255_v57  ;;  %v960_v17 = vmul.f32 %v959_v18, %v957_v19  ;;  %v963_v20 = vsub.s32 4, %v2150_v28  ;;  %v1093_v49 = vadd.s32 536870912, %v1092_v62 }
 0x10b   :  { %v387_v25 = vmul.f32 -0.001358992, %v2253_v42  ;;  %v394_v32 = vmul.f32 -0.00019511016, %v2253_v42  ;;  %v2271_v8 = vmul.f32 %v2259_v33, %v2259_v33  ;;  %vm841_vm0 = vcmp.lt.s32.totalorder %v1953_v36, 0 }
 0x10c   :  { %v413_v34 = vstv %s2228_s5  ;;  %v2423_v51 = vand.u32 2147483647, %v1953_v36  ;;  %v961_v24 = vxor.u32 2147483648, %v960_v17  ;;  %v2281_v6 = vshrl.u32 %v1093_v49, 30 }
 0x10d   :  { %v257_v9 = vsel %vm246_vm8, nan, %v256_v0  ;;  %vm618_vm6 = vcmp.eq.s32.totalorder %v616_v23, 0  ;;  %v619_v52 = vxor.u32 2147483648, %v613_v11  ;;  %v622_v44 = vxor.u32 2147483648, %v605_v14 }
 0x10e   :  { %vm2277_vm4 = vcmp.le.f32.partialorder %v2423_v51, 0.7853982  ;;  %vm621_vm9 = vcmp.eq.s32.totalorder %v616_v23, 2  ;;  %v962_v12 = vsel %vm841_vm0, %v961_v24, %v960_v17  ;;  %v964_v2 = vsel %vm841_vm0, %v963_v20, %v2150_v28 }
 0x10f   :  { %v1095_v41 = vshll.u32 %v2281_v6, 30  ;;  %v388_v59 = vadd.f32 0.041655596, %v387_v25  ;;  %v395_v29 = vadd.f32 0.008332121, %v394_v32  ;;  %v965_v35 = vsel %vm2277_vm4, %v1953_v36, %v962_v12 }
 0x110   :  { %v762_v22 = vmul.f32 -0.00019511016, %v2271_v8  ;;  %v414_v4 = vmul.f32 %v413_v34, %v257_v9  ;;  %vm617_vm10 = vcmp.lt.s32.totalorder %v616_v23, 2  ;;  %v967_v39 = vmul.f32 %v965_v35, %v965_v35 }
 0x111   :  { %v1096_v54 = vsub.s32 %v1092_v62, %v1095_v41  ;;  %v620_v55 = vsel %vm618_vm6, %v605_v14, %v619_v52  ;;  %v623_v28 = vsel %vm621_vm9, %v622_v44, %v613_v11  ;;  %v755_v26 = vmul.f32 -0.001358992, %v2271_v8 }
 0x112   :  { %v966_v38 = vsel %vm2277_vm4, 0, %v964_v2  ;;  %v968_v48 = vmul.f32 -0.001358992, %v967_v39  ;;  %v975_v7 = vmul.f32 -0.00019511016, %v967_v39  ;;  %v389_v56 = vmul.f32 %v388_v59, %v2253_v42 }
 0x113   :  { %vm1097_vm11 = vcmp.lt.s32.totalorder %v1096_v54, 0  ;;  %v1098_v37 = vsub.s32 0, %v1096_v54  ;;  %v396_v1 = vmul.f32 %v395_v29, %v2253_v42  ;;  %v763_v43 = vadd.f32 0.008332121, %v762_v22 }
 0x114   :  { %v2301_v15 = vadd.s32 3, %v385_v13  ;;  %v969_v30 = vadd.f32 0.041655596, %v968_v48  ;;  %v976_v58 = vadd.f32 0.008332121, %v975_v7  ;;  %vm614_vm12 = vweird.f32 %v1503_v27 }
 0x115   :  { %v1099_v10 = vsel %vm1097_vm11, %v1098_v37, %v1096_v54  ;;  %v624_v61 = vsel %vm617_vm10, %v620_v55, %v623_v28  ;;  %v983_v18 = vadd.s32 3, %v966_v38  ;;  %v416_v57 = vmul.f32 %v414_v4, %v1405_v60  ;;  %v2426_v37 = vld [vmem:[#allocation12_spill] sm:$0xff] }
 0x116   :  { %v1100_v53 = vclz %v1099_v10  ;;  %v756_v63 = vadd.f32 0.041655596, %v755_v26  ;;  %v970_v19 = vmul.f32 %v969_v30, %v967_v39  ;;  %v977_v62 = vmul.f32 %v976_v58, %v967_v39 }
 0x117   :  { %v390_v14 = vadd.f32 -0.4999988, %v389_v56  ;;  %v397_v11 = vadd.f32 -0.16666654, %v396_v1  ;;  %v764_v13 = vmul.f32 %v763_v43, %v2271_v8  ;;  %v625_v17 = vsel %vm614_vm12, nan, %v624_v61 }
 0x118   :  { %v1210_v0 = vadd.s32 4294967294, %v1100_v53  ;;  %v750_v20 = vsub.s32 4, %v1940_v40  ;;  %v971_v49 = vadd.f32 -0.4999988, %v970_v19  ;;  %v978_v27 = vadd.f32 -0.16666654, %v977_v62 }
 0x119   :  { %v781_v23 = vstv %s2293_s6  ;;  %v984_v25 = vand.u32 3, %v983_v18  ;;  %v1088_v32 = vadd.s32 %v2202_v21, %v2205_v46  ;;  %v757_v60 = vmul.f32 %v756_v63, %v2271_v8 }
 0x11a   :  { %vm1211_vm13 = vcmp.lt.s32.totalorder %v1210_v0, 0  ;;  %v972_v51 = vmul.f32 %v971_v49, %v967_v39  ;;  %v979_v31 = vmul.f32 %v978_v27, %v967_v39  ;;  %v765_v9 = vadd.f32 -0.16666654, %v764_v13 }
 0x11b   :  { %v1103_v24 = vsel %vm1211_vm13, 0, %v1210_v0  ;;  %v391_v2 = vmul.f32 %v390_v14, %v2253_v42  ;;  %v751_v41 = vsel %vm628_vm1, %v750_v20, %v1940_v40  ;;  %v782_v46 = vmul.f32 %v781_v23, %v625_v17 }
 0x11c   :  { %v1104_v52 = vsub.s32 32, %v1103_v24  ;;  %v1105_v44 = vshll.u32 %v1096_v54, %v1103_v24  ;;  %v1108_v12 = vsub.s32 4294967266, %v1103_v24  ;;  %v973_v59 = vadd.f32 1.0, %v972_v51 }
 0x11d   :  { %v980_v21 = vadd.f32 1.0, %v979_v31  ;;  %vm989_vm7 = vcmp.eq.s32.totalorder %v984_v25, 2  ;;  %v398_v4 = vmul.f32 %v397_v11, %v2253_v42  ;;  %v758_v39 = vadd.f32 -0.4999988, %v757_v60 }
 0x11e   :  { %v1106_v29 = vshrl.u32 %v1088_v32, %v1104_v52  ;;  %v1109_v22 = vadd.s32 127, %v1108_v12  ;;  %v990_v28 = vxor.u32 2147483648, %v973_v59  ;;  %v766_v54 = vmul.f32 %v765_v9, %v2271_v8 }
 0x11f   :  { %v981_v55 = vmul.f32 %v980_v21, %v965_v35  ;;  %vm986_vm14 = vcmp.eq.s32.totalorder %v984_v25, 0  ;;  %v753_v40 = vsel %vm2224_vm2, 0, %v751_v41  ;;  %vm985_vm15 = vcmp.lt.s32.totalorder %v984_v25, 2 }
 0x120   :  { %v1107_v26 = vor.u32 %v1106_v29, %v1105_v44  ;;  %v1110_v38 = vshll.u32 %v1109_v22, 23  ;;  %v784_v56 = vmul.f32 %v782_v46, %v2426_v37  ;;  %vm982_vm1 = vweird.f32 %v1953_v36 }
 0x121   :  { %v987_v48 = vxor.u32 2147483648, %v981_v55  ;;  %v991_v7 = vsel %vm989_vm7, %v990_v28, %v981_v55  ;;  %v399_v1 = vadd.f32 1.0, %v398_v4  ;;  %v759_v43 = vmul.f32 %v758_v39, %v2271_v8 }
 0x122   :  { %v1111_v42 = vor.u32 4788187, %v1110_v38  ;;  %v1114_v35 = vcvt.s32.f32 %v1107_v26  ;;  %v1149_v58 = vstv %s2312_s7  ;;  %v767_v10 = vadd.f32 1.0, %v766_v54 }
 0x123   :  { %v988_v30 = vsel %vm986_vm14, %v973_v59, %v987_v48  ;;  %v403_v47 = vand.u32 3, %v2301_v15  ;;  %v770_v53 = vadd.s32 3, %v753_v40  ;;  %v392_v19 = vadd.f32 1.0, %v391_v2 }
 0x124   :  { %v992_v61 = vsel %vm985_vm15, %v988_v30, %v991_v7  ;;  %v1112_v18 = vand.u32 2147483647, %v1111_v42  ;;  %v786_v62 = vadd.f32 %v784_v56, %v416_v57  ;;  %v400_v11 = vmul.f32 %v399_v1, %v2216_v50  ;;  %v2429_v57 = vld [vmem:[#allocation14_spill] sm:$0xff]  ;;  %v2430_v1 = vld [vmem:[#allocation11_spill] sm:$0xff]  ;;  %v2431_v30 = vld [vmem:[#allocation13_spill] sm:$0xff] }
 0x125   :  { %v993_v63 = vsel %vm982_vm1, nan, %v992_v61  ;;  %v760_v13 = vadd.f32 1.0, %v759_v43  ;;  %vm996_vm2 = vcmp.lt.s32.totalorder %v1974_v3, 0  ;;  %v1118_v8 = vsub.s32 4, %v2281_v6 }
 0x126   :  { %v1115_v14 = vmul.f32 %v1114_v35, %v1112_v18  ;;  %v1150_v36 = vmul.f32 %v1149_v58, %v993_v63  ;;  %v768_v0 = vmul.f32 %v767_v10, %v2259_v33  ;;  %vm2337_vm3 = vcmp.le.f32.partialorder %v994_v5, 0.7853982 }
 0x127   :  { %v771_v49 = vand.u32 3, %v770_v53  ;;  %vm405_vm5 = vcmp.eq.s32.totalorder %v403_v47, 0  ;;  %v406_v25 = vxor.u32 2147483648, %v400_v11  ;;  %v409_v32 = vxor.u32 2147483648, %v392_v19 }
 0x128   :  { %v1116_v17 = vxor.u32 2147483648, %v1115_v14  ;;  %v1152_v20 = vmul.f32 %v1150_v36, %v2429_v57  ;;  %v1119_v60 = vsel %vm996_vm2, %v1118_v8, %v2281_v6  ;;  %vm408_vm8 = vcmp.eq.s32.totalorder %v403_v47, 2 }
 0x129   :  { %v774_v5 = vxor.u32 2147483648, %v768_v0  ;;  %v777_v51 = vxor.u32 2147483648, %v760_v13  ;;  %vm773_vm0 = vcmp.eq.s32.totalorder %v771_v49, 0  ;;  %vm776_vm4 = vcmp.eq.s32.totalorder %v771_v49, 2 }
 0x12a   :  { %v1117_v27 = vsel %vm996_vm2, %v1116_v17, %v1115_v14  ;;  %v1154_v50 = vadd.f32 %v1152_v20, %v786_v62  ;;  %v1121_v24 = vsel %vm2337_vm3, 0, %v1119_v60  ;;  %vm404_vm6 = vcmp.lt.s32.totalorder %v403_v47, 2 }
 0x12b   :  { %v1120_v33 = vsel %vm2337_vm3, %v1974_v3, %v1117_v27  ;;  %v407_v44 = vsel %vm405_vm5, %v392_v19, %v406_v25  ;;  %v410_v6 = vsel %vm408_vm8, %v409_v32, %v400_v11  ;;  %vm772_vm9 = vcmp.lt.s32.totalorder %v771_v49, 2 }
 0x12c   :  { %v1122_v31 = vmul.f32 %v1120_v33, %v1120_v33  ;;  %1156 = vst [vmem:[#allocation7] sm:$0xff] %v1154_v50  ;;  %v775_v12 = vsel %vm773_vm0, %v760_v13, %v774_v5  ;;  %v778_v2 = vsel %vm776_vm4, %v777_v51, %v768_v0  ;;  %v1138_v21 = vadd.s32 3, %v1121_v24 }
 0x12d   :  { %vm401_vm10 = vweird.f32 %v1419_v16  ;;  %v411_v22 = vsel %vm404_vm6, %v407_v44, %v410_v6  ;;  %vm769_vm11 = vweird.f32 %v1733_v45  ;;  %v779_v4 = vsel %vm772_vm9, %v775_v12, %v778_v2 }
 0x12e   :  { %v1123_v9 = vmul.f32 -0.001358992, %v1122_v31  ;;  %v1130_v52 = vmul.f32 -0.00019511016, %v1122_v31  ;;  %v1139_v28 = vand.u32 3, %v1138_v21  ;;  %v412_v54 = vsel %vm401_vm10, nan, %v411_v22 }
 0x12f   :  { %v780_v26 = vsel %vm769_vm11, nan, %v779_v4  ;;  %v415_v37 = vmul.f32 %v413_v34, %v412_v54  ;;  %vm1137_vm14 = vweird.f32 %v1974_v3 }
 0x130   :  { %v1124_v41 = vadd.f32 0.041655596, %v1123_v9  ;;  %v1131_v59 = vadd.f32 0.008332121, %v1130_v52  ;;  %v783_v56 = vmul.f32 %v781_v23, %v780_v26  ;;  %vm1144_vm12 = vcmp.eq.s32.totalorder %v1139_v28, 2  ;;  %v2432_v23 = vld [vmem:[#allocation15_spill] sm:$0xff] }
 0x131   :  { %vm1141_vm13 = vcmp.eq.s32.totalorder %v1139_v28, 0  ;;  %vm1140_vm7 = vcmp.lt.s32.totalorder %v1139_v28, 2  ;;  %v417_v43 = vmul.f32 %v415_v37, %v2430_v1 }
 0x132   :  { %v1125_v46 = vmul.f32 %v1124_v41, %v1122_v31  ;;  %v1132_v29 = vmul.f32 %v1131_v59, %v1122_v31  ;;  %v785_v10 = vmul.f32 %v783_v56, %v2431_v30 }
 0x134   :  { %v1126_v39 = vadd.f32 -0.4999988, %v1125_v46  ;;  %v1133_v55 = vadd.f32 -0.16666654, %v1132_v29  ;;  %v787_v34 = vadd.f32 %v785_v10, %v417_v43 }
 0x136   :  { %v1127_v38 = vmul.f32 %v1126_v39, %v1122_v31  ;;  %v1134_v40 = vmul.f32 %v1133_v55, %v1122_v31 }
 0x138   :  { %v1128_v48 = vadd.f32 1.0, %v1127_v38  ;;  %v1135_v7 = vadd.f32 1.0, %v1134_v40 }
 0x13a   :  { %v1136_v16 = vmul.f32 %v1135_v7, %v1120_v33  ;;  %v1145_v42 = vxor.u32 2147483648, %v1128_v48 }
 0x13c   :  { %v1142_v45 = vxor.u32 2147483648, %v1136_v16  ;;  %v1146_v35 = vsel %vm1144_vm12, %v1145_v42, %v1136_v16 }
 0x13e   :  { %v1143_v61 = vsel %vm1141_vm13, %v1128_v48, %v1142_v45 }
 0x13f   :  { %v1147_v18 = vsel %vm1140_vm7, %v1143_v61, %v1146_v35 }
 0x140   :  { %v1148_v47 = vsel %vm1137_vm14, nan, %v1147_v18 }
 0x141   :  { %v1151_v53 = vmul.f32 %v1149_v58, %v1148_v47 }
 0x143   :  { %v1153_v63 = vmul.f32 %v1151_v53, %v2432_v23 }
 0x145   :  { %v1155_v19 = vadd.f32 %v1153_v63, %v787_v34 }
 0x147   :  { %1157 = vst [vmem:[#allocation7 + $0x8] sm:$0xff] %v1155_v19 }
 0x148   :  { %1170 = dma.vmem_to_hbm [thread:$0]  %s1163_s9, 256, %s1165_s12, [#allocation6], %s1306_s18, %s1306_s18, %s1307_s19  }
 0x149   :  { %1302 = dma.done.wait [#allocation6], 256  }
 0x14a   :  { %1303 = vsyncadd [#allocation6], 4294967040 }
 0x14b   :  { %1175 = vsyncpa [#allocation5], 1 }
 0x14c   :  { %1176 = vsyncpa [#allocation6], 1 }

</bundles_post_ra>
